<compile_context>
chip_gen: v7x
topology: tpu7x:2x2x1
jax: 0.10.0
libtpu: 0.0.40
codegen_flags: <defaults>
</compile_context>

<pallas_src>
import functools

import numpy as np
import jax
import jax.numpy as jnp
from jax import lax
from jax.experimental import pallas as pl
from jax.experimental.pallas import tpu as pltpu


def _round_up(x, m):
    return -(-x // m) * m


def _full_spec(shape):
    zeros = (0,) * len(shape)
    return pl.BlockSpec(shape, lambda i: zeros)


# ---------------------------------------------------------------------------
# Fused forward kernel
# ---------------------------------------------------------------------------
def _fused_forward_kernel(
    x_ref, adj_ref,
    wemb_ref, bemb_ref,
    wblk1_ref, proj1_ref, b1_ref, lng_ref, lnb_ref,
    wblk2_ref, proj2_ref, b2_ref,
    wagg_ref, bagg_ref,
    wdec_ref, bdec_ref,
    wrec_ref, brec_ref,
    out_ref,
    *, heads, c1, c2, hidden, f_out, dst_chunk,
):
    f32 = jnp.float32
    bf16 = jnp.bfloat16
    n = x_ref.shape[0]

    # ---- adjacency handling hoisted once (int8 -> f32 mask + additive bias) ----
    adj_f = adj_ref[...].astype(f32)                    # [N, N] 0/1
    neg_bias = (adj_f - 1.0) * 1e30                     # 0 on edges, -1e30 elsewhere

    # ---- input embeddings: x @ blockdiag(W_rna, W_prot, W_spa) + b ----
    x_in = (jnp.dot(x_ref[...].astype(bf16), wemb_ref[...],
                    preferred_element_type=f32) + bemb_ref[...])       # [N, 3E]

    def gat_plus_lin(x, wblk_ref, proj_ref, bias_ref, c):
        """GATConv(heads, concat=True) + parallel Linear + fused bias."""
        hc = heads * c
        seg = _round_up(hc, 128)                        # 128-lane aligned segments
        y = jnp.dot(x.astype(bf16), wblk_ref[...],
                    preferred_element_type=f32)         # [N, 2*seg]
        xw = y[:, :seg]                                 # conv transform  (aligned)
        lin = y[:, seg:]                                # parallel Linear (aligned)
        xw_b = xw.astype(bf16)
        # alpha_src (rows 0..H-1) and alpha_dst (rows H..2H-1) for all heads in
        # ONE block-diagonal matmul against (xW)^T -> [2H, N].
        ad = lax.dot_general(proj_ref[...], xw_b, (((1,), (1,)), ((), ())),
                             preferred_element_type=f32)
        a_src = ad[:heads]                              # [H, N]
        a_dst = ad[heads:]                              # [H, N]

        row_blocks = []
        for i0 in range(0, n, dst_chunk):               # static dst-row chunking
            cs = min(dst_chunk, n - i0)
            # Softmax batched over ALL heads: [H, cs, N]
            logits = a_dst[:, i0:i0 + cs][:, :, None] + a_src[:, None, :]
            logits = jnp.maximum(logits, 0.2 * logits)  # leaky_relu(0.2)
            logits = logits + neg_bias[None, i0:i0 + cs, :]
            m = jnp.max(logits, axis=-1, keepdims=True)
            p = jnp.exp(logits - m) * adj_f[None, i0:i0 + cs, :]
            denom = jnp.sum(p, axis=-1, keepdims=True)
            inv = pl.reciprocal(jnp.where(denom > 0.0, denom, 1.0), approx=True)
            attn = (p * inv).astype(bf16)               # rows w/o in-edges -> 0
            # Per-head AV matmuls (MXU has slack); fuse lin + bias in registers,
            # no VMEM scratch round-trip.
            head_outs = [
                jnp.dot(attn[h], xw_b[:, h * c:(h + 1) * c],
                        preferred_element_type=f32)
                for h in range(heads)]
            row_blocks.append(jnp.concatenate(head_outs, axis=-1)
                              + lin[i0:i0 + cs, :hc] + bias_ref[...])
        if len(row_blocks) == 1:
            return row_blocks[0]
        return jnp.concatenate(row_blocks, axis=0)      # [N, hc]

    # ---- last GraphAttnBlock (earlier blocks are dead in the reference loop) ----
    h1 = gat_plus_lin(x_in, wblk1_ref, proj1_ref, b1_ref, c1)
    # LayerNorm(eps=1e-5, biased variance) + ReLU, all f32
    mu = jnp.mean(h1, axis=-1, keepdims=True)
    var = jnp.mean((h1 - mu) ** 2, axis=-1, keepdims=True)
    h1 = jnp.maximum((h1 - mu) * lax.rsqrt(var + 1e-5) * lng_ref[...] + lnb_ref[...],
                     0.0)
    h2 = gat_plus_lin(h1, wblk2_ref, proj2_ref, b2_ref, c2)

    # ---- cross_attn_agg + ReLU -> embedding; packed decode + recon ----
    emb = jnp.maximum(
        jnp.dot(h2.astype(bf16), wagg_ref[...], preferred_element_type=f32)
        + bagg_ref[...], 0.0)
    dec = (jnp.dot(emb.astype(bf16), wdec_ref[...], preferred_element_type=f32)
           + bdec_ref[...])                                            # [N, 3E]
    recon = (jnp.dot(dec.astype(bf16), wrec_ref[...], preferred_element_type=f32)
             + brec_ref[...])                                          # [N, f_out]

    # ---- single lane-dense output slab: [recon | embedding | zero pad] ----
    pad = out_ref.shape[1] - (f_out + hidden)
    pieces = [recon, emb]
    if pad > 0:
        pieces.append(jnp.zeros((n, pad), f32))
    out_ref[...] = jnp.concatenate(pieces, axis=-1)


def _call_fused(x_feat, adj, pk, *, heads, c1, c2, hidden, f_out, dst_chunk=128):
    n = x_feat.shape[0]
    out_pad = _round_up(f_out + hidden, 128)
    args = (
        x_feat, adj,
        pk["wemb"], pk["bemb"],
        pk["wblk1"], pk["proj1"], pk["b1"], pk["ln_g"], pk["ln_b"],
        pk["wblk2"], pk["proj2"], pk["b2"],
        pk["wagg"], pk["bagg"],
        pk["wdec"], pk["bdec"],
        pk["wrec"], pk["brec"],
    )
    return pl.pallas_call(
        functools.partial(_fused_forward_kernel, heads=heads, c1=c1, c2=c2,
                          hidden=hidden, f_out=f_out,
                          dst_chunk=max(1, min(dst_chunk, n))),
        out_shape=jax.ShapeDtypeStruct((n, out_pad), jnp.float32),
        grid=(1,),
        in_specs=[_full_spec(a.shape) for a in args],
        out_specs=_full_spec((n, out_pad)),
        compiler_params=pltpu.CompilerParams(
            dimension_semantics=("arbitrary",),
            vmem_limit_bytes=32 * 1024 * 1024),
    )(*args)


# ---------------------------------------------------------------------------
# Wrapper: full forward pass (permute=False branch of the reference module)
# ---------------------------------------------------------------------------
def forward(x_feat, adj, pk, *, heads, rna_dim, prot_dim):
    hc1 = pk["b1"].shape[1]
    hc2 = pk["b2"].shape[1]
    hidden = pk["wagg"].shape[1]
    f_out = pk["wrec"].shape[1]
    combined = _call_fused(
        x_feat, adj, pk,
        heads=heads, c1=hc1 // heads, c2=hc2 // heads,
        hidden=hidden, f_out=f_out)
    recon = combined[:, :f_out]
    embedding = combined[:, f_out:f_out + hidden]
    rna_recon = recon[:, :rna_dim]
    prot_recon = recon[:, rna_dim:rna_dim + prot_dim]
    spa_recon = recon[:, rna_dim + prot_dim:]
    return rna_recon, prot_recon, spa_recon, embedding


# ---------------------------------------------------------------------------
# Parameter construction (synthetic, deterministic; shapes follow __init__)
# ---------------------------------------------------------------------------
def init_linear(key, din, dout):
    k1, k2 = jax.random.split(key)
    w = jax.random.normal(k1, (din, dout), jnp.float32) / jnp.sqrt(float(din))
    b = 0.01 * jax.random.normal(k2, (dout,), jnp.float32)
    return (w, b)


def init_layernorm(d):
    return (jnp.ones((d,), jnp.float32), jnp.zeros((d,), jnp.float32))


def init_gat(key, din, out_ch, heads):
    k1, k2, k3, k4 = jax.random.split(key, 4)
    return dict(
        w=jax.random.normal(k1, (din, heads * out_ch), jnp.float32) / jnp.sqrt(float(din)),
        att_src=0.1 * jax.random.normal(k2, (heads, out_ch), jnp.float32),
        att_dst=0.1 * jax.random.normal(k3, (heads, out_ch), jnp.float32),
        bias=0.01 * jax.random.normal(k4, (heads * out_ch,), jnp.float32),
    )


def init_params(key, rna_dim, prot_dim, spatial_dim, hidden_dim, emb_dim, heads, num_blocks):
    keys = iter(jax.random.split(key, 64))
    p = {}
    p["rna_embedding"] = init_linear(next(keys), rna_dim, emb_dim)
    p["prot_embedding"] = init_linear(next(keys), prot_dim, emb_dim)
    p["spatial_encoder"] = init_linear(next(keys), spatial_dim, emb_dim)
    x_in_dim = 3 * emb_dim                       # cat([rna, prot, spatial], dim=1)
    blocks = []
    for i in range(num_blocks):
        cin = emb_dim if i == 0 else hidden_dim  # per-head channels of conv1/lin1/ln
        cout = hidden_dim
        blocks.append({
            "conv1": init_gat(next(keys), x_in_dim, cin, heads),   # lazy (-1) in = x_input
            "lin1": init_linear(next(keys), x_in_dim, cin * heads),
            "ln": init_layernorm(cin * heads),
            "conv2": init_gat(next(keys), cin * heads, cout, heads),
            "lin2": init_linear(next(keys), cin * heads, cout * heads),
        })
    p["blocks"] = blocks
    p["cross_attn_agg"] = init_linear(next(keys), hidden_dim * heads, hidden_dim)
    p["rna_decoding"] = init_linear(next(keys), hidden_dim, emb_dim)
    p["prot_decoding"] = init_linear(next(keys), hidden_dim, emb_dim)
    p["spatial_decoding"] = init_linear(next(keys), hidden_dim, emb_dim)
    p["rna_recon"] = init_linear(next(keys), emb_dim, rna_dim)
    p["prot_recon"] = init_linear(next(keys), emb_dim, prot_dim)
    p["spatial_recon"] = init_linear(next(keys), emb_dim, spatial_dim)
    return p


# ---------------------------------------------------------------------------
# Parameter packing: fold / fuse weights into kernel-ready (mostly bf16) mats.
# Done once, outside the hot path.
# ---------------------------------------------------------------------------
def _block_diag(mats):
    mats = [jnp.asarray(m, jnp.float32) for m in mats]
    rows = sum(m.shape[0] for m in mats)
    cols = sum(m.shape[1] for m in mats)
    out = jnp.zeros((rows, cols), jnp.float32)
    r = c = 0
    for m in mats:
        out = out.at[r:r + m.shape[0], c:c + m.shape[1]].set(m)
        r += m.shape[0]
        c += m.shape[1]
    return out


def _pack_gat_and_lin(gat, lin, heads):
    """Pack GATConv + parallel Linear: [W_conv | W_lin] with 128-aligned segments,
    plus a single [2H, seg] alpha projection (att_src rows then att_dst rows)."""
    w, a_src, a_dst, g_bias = gat["w"], gat["att_src"], gat["att_dst"], gat["bias"]
    wl, bl = lin
    c = a_src.shape[1]
    hc = heads * c
    seg = _round_up(hc, 128)
    din = w.shape[0]
    w_pad = jnp.zeros((din, seg), jnp.float32).at[:, :hc].set(w)
    wl_pad = jnp.zeros((din, seg), jnp.float32).at[:, :hc].set(wl)
    wblk = jnp.concatenate([w_pad, wl_pad], axis=1).astype(jnp.bfloat16)  # [din, 2*seg]
    proj = jnp.zeros((2 * heads, seg), jnp.float32)
    for h in range(heads):
        proj = proj.at[h, h * c:(h + 1) * c].set(a_src[h])
        proj = proj.at[heads + h, h * c:(h + 1) * c].set(a_dst[h])
    b_total = (g_bias + bl).reshape(1, hc)                                # conv + lin bias
    return wblk, proj.astype(jnp.bfloat16), b_total


def pack_params(params, heads):
    pk = {}
    w_r, b_r = params["rna_embedding"]
    w_p, b_p = params["prot_embedding"]
    w_s, b_s = params["spatial_encoder"]
    pk["wemb"] = _block_diag([w_r, w_p, w_s]).astype(jnp.bfloat16)
    pk["bemb"] = jnp.concatenate([b_r, b_p, b_s]).reshape(1, -1)

    # Only the LAST block reaches the outputs (reference loop overwrites x each
    # iteration with block(x_input)); earlier blocks are dead compute.
    blk = params["blocks"][-1]
    pk["wblk1"], pk["proj1"], pk["b1"] = _pack_gat_and_lin(blk["conv1"], blk["lin1"], heads)
    gamma, beta = blk["ln"]
    pk["ln_g"] = gamma.reshape(1, -1)
    pk["ln_b"] = beta.reshape(1, -1)
    pk["wblk2"], pk["proj2"], pk["b2"] = _pack_gat_and_lin(blk["conv2"], blk["lin2"], heads)

    wagg, bagg = params["cross_attn_agg"]
    pk["wagg"] = wagg.astype(jnp.bfloat16)
    pk["bagg"] = bagg.reshape(1, -1)

    wdr, bdr = params["rna_decoding"]
    wdp, bdp = params["prot_decoding"]
    wds, bds = params["spatial_decoding"]
    pk["wdec"] = jnp.concatenate([wdr, wdp, wds], axis=1).astype(jnp.bfloat16)
    pk["bdec"] = jnp.concatenate([bdr, bdp, bds]).reshape(1, -1)

    wrr, brr = params["rna_recon"]
    wrp, brp = params["prot_recon"]
    wrs, brs = params["spatial_recon"]
    pk["wrec"] = _block_diag([wrr, wrp, wrs]).astype(jnp.bfloat16)
    pk["brec"] = jnp.concatenate([brr, brp, brs]).reshape(1, -1)
    return pk


# ---------------------------------------------------------------------------
# Pure-JAX reference (mirrors the PyTorch forward, incl. running ALL blocks),
# with bf16-cast weights like the kernel but exact softmax division.
# ---------------------------------------------------------------------------
def _reference_forward(x_feat, adj, params, *, heads, rna_dim, prot_dim):
    f32, bf16 = jnp.float32, jnp.bfloat16
    adj_f = jnp.asarray(adj, f32)

    def lin(x, wb):
        w, b = wb
        return jnp.dot(x.astype(bf16), w.astype(bf16), preferred_element_type=f32) + b

    rna_e = lin(x_feat[:, :rna_dim], params["rna_embedding"])
    prot_e = lin(x_feat[:, rna_dim:rna_dim + prot_dim], params["prot_embedding"])
    spa_e = lin(x_feat[:, rna_dim + prot_dim:], params["spatial_encoder"])
    x_in = jnp.concatenate([rna_e, prot_e, spa_e], axis=1)

    def gat(x, g):
        xw = jnp.dot(x.astype(bf16), g["w"].astype(bf16), preferred_element_type=f32)
        c = g["att_src"].shape[1]
        outs = []
        for h in range(heads):
            xwh = xw[:, h * c:(h + 1) * c]
            a_src = jnp.dot(xwh.astype(bf16), g["att_src"][h].astype(bf16),
                            preferred_element_type=f32)
            a_dst = jnp.dot(xwh.astype(bf16), g["att_dst"][h].astype(bf16),
                            preferred_element_type=f32)
            logit = a_dst[:, None] + a_src[None, :]
            logit = jnp.where(logit >= 0.0, logit, 0.2 * logit)
            masked = jnp.where(adj_f > 0.0, logit, -jnp.inf)
            m = jnp.max(masked, axis=-1, keepdims=True)
            m = jnp.where(jnp.isfinite(m), m, 0.0)
            p = jnp.where(adj_f > 0.0, jnp.exp(masked - m), 0.0)
            den = jnp.sum(p, axis=-1, keepdims=True)
            attn = p / jnp.where(den > 0.0, den, 1.0)
            outs.append(jnp.dot(attn.astype(bf16), xwh.astype(bf16),
                                preferred_element_type=f32))
        return jnp.concatenate(outs, axis=-1) + g["bias"]

    def block(x, blk):
        h = gat(x, blk["conv1"]) + lin(x, blk["lin1"])
        gamma, beta = blk["ln"]
        mu = jnp.mean(h, axis=-1, keepdims=True)
        var = jnp.mean((h - mu) ** 2, axis=-1, keepdims=True)
        h = jax.nn.relu((h - mu) / jnp.sqrt(var + 1e-5) * gamma + beta)
        return gat(h, blk["conv2"]) + lin(h, blk["lin2"])

    x = x_in
    for blk in params["blocks"]:          # exactly like the PyTorch loop: x = block(x_input)
        x = block(x_in, blk)
    emb = jax.nn.relu(lin(x, params["cross_attn_agg"]))
    rna_recon = lin(lin(emb, params["rna_decoding"]), params["rna_recon"])
    prot_recon = lin(lin(emb, params["prot_decoding"]), params["prot_recon"])
    spa_recon = lin(lin(emb, params["spatial_decoding"]), params["spatial_recon"])
    return rna_recon, prot_recon, spa_recon, emb


if __name__ == "__main__":
    RNA, PROT, SPATIAL = 8, 6, 2
    HIDDEN, EMB, HEADS, NUM_BLOCKS = 32, 16, 4, 2
    N = 16  # number of graph nodes

    key = jax.random.PRNGKey(0)
    k_x, k_p = jax.random.split(key)
    x_feat = jax.random.normal(k_x, (N, RNA + PROT + SPATIAL), jnp.float32)

    # deterministic graph: bidirectional ring, no self-loops (add_self_loops=False)
    src = np.concatenate([np.arange(N), (np.arange(N) + 1) % N])
    dst = np.concatenate([(np.arange(N) + 1) % N, np.arange(N)])
    adj_np = np.zeros((N, N), np.int8)
    adj_np[dst, src] = 1                       # adj[i, j] = 1 iff edge j -> i
    adj = jnp.asarray(adj_np, jnp.int8)        # int8 mask: N^2 bytes of HBM traffic

    params = init_params(k_p, RNA, PROT, SPATIAL, HIDDEN, EMB, HEADS, NUM_BLOCKS)
    packed = pack_params(params, HEADS)

    fwd = jax.jit(functools.partial(forward, heads=HEADS, rna_dim=RNA, prot_dim=PROT))
    outs = jax.block_until_ready(fwd(x_feat, adj, packed))
    rna_recon, prot_recon, spa_recon, embedding = outs
    assert rna_recon.shape == (N, RNA)
    assert prot_recon.shape == (N, PROT)
    assert spa_recon.shape == (N, SPATIAL)
    assert embedding.shape == (N, HIDDEN)
    assert all(bool(jnp.all(jnp.isfinite(o))) for o in outs)

    # Loose-tolerance check against the pure-JAX reference (bf16 weights, exact
    # softmax); residual diffs come from the approx reciprocal / packing order.
    refs = _reference_forward(x_feat, adj, params,
                              heads=HEADS, rna_dim=RNA, prot_dim=PROT)
    for got, ref in zip(outs, refs):
        np.testing.assert_allclose(np.asarray(got), np.asarray(ref),
                                   rtol=3e-2, atol=3e-2)
    print("KERNEL_OK")
</pallas_src>

<mosaic_0001>
module attributes {stable_mosaic.version = 11 : i64} {
  func.func @_fused_forward_kernel(%arg0: i32, %arg1: memref<16x16xf32, #tpu.memory_space<vmem>>, %arg2: memref<16x16xi8, #tpu.memory_space<vmem>>, %arg3: memref<16x48xbf16, #tpu.memory_space<vmem>>, %arg4: memref<1x48xf32, #tpu.memory_space<vmem>>, %arg5: memref<48x256xbf16, #tpu.memory_space<vmem>>, %arg6: memref<8x128xbf16, #tpu.memory_space<vmem>>, %arg7: memref<1x128xf32, #tpu.memory_space<vmem>>, %arg8: memref<1x128xf32, #tpu.memory_space<vmem>>, %arg9: memref<1x128xf32, #tpu.memory_space<vmem>>, %arg10: memref<128x256xbf16, #tpu.memory_space<vmem>>, %arg11: memref<8x128xbf16, #tpu.memory_space<vmem>>, %arg12: memref<1x128xf32, #tpu.memory_space<vmem>>, %arg13: memref<128x32xbf16, #tpu.memory_space<vmem>>, %arg14: memref<1x32xf32, #tpu.memory_space<vmem>>, %arg15: memref<32x48xbf16, #tpu.memory_space<vmem>>, %arg16: memref<1x48xf32, #tpu.memory_space<vmem>>, %arg17: memref<48x16xbf16, #tpu.memory_space<vmem>>, %arg18: memref<1x16xf32, #tpu.memory_space<vmem>>, %arg19: memref<16x128xf32, #tpu.memory_space<vmem>>) attributes {dimension_semantics = [#tpu.dimension_semantics<arbitrary>], iteration_bounds = array<i64: 1>, scalar_prefetch = 0 : i64, scratch_operands = 0 : i64, tpu.core_type = #tpu.core_type<tc>, window_params = [{pipeline_mode = #tpu.pipeline_mode<synchronous>, transform_indices = @transform_0, window_bounds = array<i64: 16, 16>}, {pipeline_mode = #tpu.pipeline_mode<synchronous>, transform_indices = @transform_1, window_bounds = array<i64: 16, 16>}, {pipeline_mode = #tpu.pipeline_mode<synchronous>, transform_indices = @transform_2, window_bounds = array<i64: 16, 48>}, {pipeline_mode = #tpu.pipeline_mode<synchronous>, transform_indices = @transform_3, window_bounds = array<i64: 1, 48>}, {pipeline_mode = #tpu.pipeline_mode<synchronous>, transform_indices = @transform_4, window_bounds = array<i64: 48, 256>}, {pipeline_mode = #tpu.pipeline_mode<synchronous>, transform_indices = @transform_5, window_bounds = array<i64: 8, 128>}, {pipeline_mode = #tpu.pipeline_mode<synchronous>, transform_indices = @transform_6, window_bounds = array<i64: 1, 128>}, {pipeline_mode = #tpu.pipeline_mode<synchronous>, transform_indices = @transform_7, window_bounds = array<i64: 1, 128>}, {pipeline_mode = #tpu.pipeline_mode<synchronous>, transform_indices = @transform_8, window_bounds = array<i64: 1, 128>}, {pipeline_mode = #tpu.pipeline_mode<synchronous>, transform_indices = @transform_9, window_bounds = array<i64: 128, 256>}, {pipeline_mode = #tpu.pipeline_mode<synchronous>, transform_indices = @transform_10, window_bounds = array<i64: 8, 128>}, {pipeline_mode = #tpu.pipeline_mode<synchronous>, transform_indices = @transform_11, window_bounds = array<i64: 1, 128>}, {pipeline_mode = #tpu.pipeline_mode<synchronous>, transform_indices = @transform_12, window_bounds = array<i64: 128, 32>}, {pipeline_mode = #tpu.pipeline_mode<synchronous>, transform_indices = @transform_13, window_bounds = array<i64: 1, 32>}, {pipeline_mode = #tpu.pipeline_mode<synchronous>, transform_indices = @transform_14, window_bounds = array<i64: 32, 48>}, {pipeline_mode = #tpu.pipeline_mode<synchronous>, transform_indices = @transform_15, window_bounds = array<i64: 1, 48>}, {pipeline_mode = #tpu.pipeline_mode<synchronous>, transform_indices = @transform_16, window_bounds = array<i64: 48, 16>}, {pipeline_mode = #tpu.pipeline_mode<synchronous>, transform_indices = @transform_17, window_bounds = array<i64: 1, 16>}, {pipeline_mode = #tpu.pipeline_mode<synchronous>, transform_indices = @transform_18, window_bounds = array<i64: 16, 128>}]} {
    %c0 = arith.constant 0 : index
    %c0_0 = arith.constant 0 : index
    %0 = vector.load %arg2[%c0, %c0_0] : memref<16x16xi8, #tpu.memory_space<vmem>>, vector<16x16xi8>
    %1 = arith.sitofp %0 : vector<16x16xi8> to vector<16x16xf32>
    %cst = arith.constant 1.000000e+00 : f32
    %2 = vector.broadcast %cst : f32 to vector<16x16xf32>
    %3 = arith.subf %1, %2 : vector<16x16xf32>
    %cst_1 = arith.constant 1.000000e+30 : f32
    %4 = vector.broadcast %cst_1 : f32 to vector<16x16xf32>
    %5 = arith.mulf %3, %4 : vector<16x16xf32>
    %c0_2 = arith.constant 0 : index
    %c0_3 = arith.constant 0 : index
    %6 = vector.load %arg1[%c0_2, %c0_3] : memref<16x16xf32, #tpu.memory_space<vmem>>, vector<16x16xf32>
    %7 = arith.truncf %6 : vector<16x16xf32> to vector<16x16xbf16>
    %c0_4 = arith.constant 0 : index
    %c0_5 = arith.constant 0 : index
    %8 = vector.load %arg3[%c0_4, %c0_5] : memref<16x48xbf16, #tpu.memory_space<vmem>>, vector<16x48xbf16>
    %cst_6 = arith.constant dense<0.000000e+00> : vector<16x48xf32>
    %9 = tpu.matmul %7, %8, %cst_6 {dimension_numbers = #tpu.dot_dimension_numbers<[1], [0], [0], [1], [0, 0, 1, 1], [], []>} : vector<16x16xbf16>, vector<16x48xbf16>, vector<16x48xf32> -> vector<16x48xf32>
    %c0_7 = arith.constant 0 : index
    %c0_8 = arith.constant 0 : index
    %10 = vector.load %arg4[%c0_7, %c0_8] : memref<1x48xf32, #tpu.memory_space<vmem>>, vector<1x48xf32>
    %11 = vector.broadcast %10 : vector<1x48xf32> to vector<16x48xf32>
    %12 = arith.addf %9, %11 : vector<16x48xf32>
    %13 = arith.truncf %12 : vector<16x48xf32> to vector<16x48xbf16>
    %c0_9 = arith.constant 0 : index
    %c0_10 = arith.constant 0 : index
    %14 = vector.load %arg5[%c0_9, %c0_10] : memref<48x256xbf16, #tpu.memory_space<vmem>>, vector<48x256xbf16>
    %cst_11 = arith.constant dense<0.000000e+00> : vector<16x256xf32>
    %15 = tpu.matmul %13, %14, %cst_11 {dimension_numbers = #tpu.dot_dimension_numbers<[1], [0], [0], [1], [0, 0, 1, 1], [], []>} : vector<16x48xbf16>, vector<48x256xbf16>, vector<16x256xf32> -> vector<16x256xf32>
    %16 = vector.extract_strided_slice %15 {offsets = [0, 0], sizes = [16, 128], strides = [1, 1]} : vector<16x256xf32> to vector<16x128xf32>
    %17 = vector.extract_strided_slice %15 {offsets = [0, 128], sizes = [16, 128], strides = [1, 1]} : vector<16x256xf32> to vector<16x128xf32>
    %18 = arith.truncf %16 : vector<16x128xf32> to vector<16x128xbf16>
    %c0_12 = arith.constant 0 : index
    %c0_13 = arith.constant 0 : index
    %19 = vector.load %arg6[%c0_12, %c0_13] : memref<8x128xbf16, #tpu.memory_space<vmem>>, vector<8x128xbf16>
    %cst_14 = arith.constant dense<0.000000e+00> : vector<8x16xf32>
    %20 = tpu.matmul %19, %18, %cst_14 {dimension_numbers = #tpu.dot_dimension_numbers<[1], [1], [0], [0], [0, 0, 1, 0], [], []>} : vector<8x128xbf16>, vector<16x128xbf16>, vector<8x16xf32> -> vector<8x16xf32>
    %21 = vector.extract_strided_slice %20 {offsets = [0, 0], sizes = [4, 16], strides = [1, 1]} : vector<8x16xf32> to vector<4x16xf32>
    %22 = vector.extract_strided_slice %20 {offsets = [4, 0], sizes = [4, 16], strides = [1, 1]} : vector<8x16xf32> to vector<4x16xf32>
    %23 = vector.shape_cast %22 : vector<4x16xf32> to vector<4x16x1xf32>
    %24 = vector.shape_cast %21 : vector<4x16xf32> to vector<4x1x16xf32>
    %25 = vector.broadcast %23 : vector<4x16x1xf32> to vector<4x16x16xf32>
    %26 = vector.broadcast %24 : vector<4x1x16xf32> to vector<4x16x16xf32>
    %27 = arith.addf %25, %26 : vector<4x16x16xf32>
    %cst_15 = arith.constant 2.000000e-01 : f32
    %28 = vector.broadcast %cst_15 : f32 to vector<4x16x16xf32>
    %29 = arith.mulf %28, %27 : vector<4x16x16xf32>
    %30 = arith.maximumf %27, %29 : vector<4x16x16xf32>
    %31 = vector.shape_cast %5 : vector<16x16xf32> to vector<1x16x16xf32>
    %32 = vector.broadcast %31 : vector<1x16x16xf32> to vector<4x16x16xf32>
    %33 = arith.addf %30, %32 : vector<4x16x16xf32>
    %cst_16 = arith.constant dense<0xFF800000> : vector<4x16xf32>
    %34 = vector.multi_reduction <maximumf>, %33, %cst_16 [2] : vector<4x16x16xf32> to vector<4x16xf32>
    %35 = vector.shape_cast %34 : vector<4x16xf32> to vector<4x16x1xf32>
    %36 = vector.broadcast %35 : vector<4x16x1xf32> to vector<4x16x16xf32>
    %37 = arith.subf %33, %36 : vector<4x16x16xf32>
    %38 = math.exp %37 : vector<4x16x16xf32>
    %39 = vector.shape_cast %1 : vector<16x16xf32> to vector<1x16x16xf32>
    %40 = vector.broadcast %39 : vector<1x16x16xf32> to vector<4x16x16xf32>
    %41 = arith.mulf %38, %40 : vector<4x16x16xf32>
    %cst_17 = arith.constant dense<0.000000e+00> : vector<4x16xf32>
    %42 = vector.multi_reduction <add>, %41, %cst_17 [2] : vector<4x16x16xf32> to vector<4x16xf32>
    %43 = vector.shape_cast %42 : vector<4x16xf32> to vector<4x16x1xf32>
    %cst_18 = arith.constant 0.000000e+00 : f32
    %44 = vector.broadcast %cst_18 : f32 to vector<4x16x1xf32>
    %45 = arith.cmpf ogt, %43, %44 : vector<4x16x1xf32>
    %cst_19 = arith.constant 1.000000e+00 : f32
    %46 = vector.broadcast %cst_19 : f32 to vector<4x16x1xf32>
    %47 = arith.select %45, %43, %46 : vector<4x16x1xi1>, vector<4x16x1xf32>
    %48 = tpu.reciprocal %47 {approx = true} : vector<4x16x1xf32> -> vector<4x16x1xf32>
    %49 = vector.broadcast %48 : vector<4x16x1xf32> to vector<4x16x16xf32>
    %50 = arith.mulf %41, %49 : vector<4x16x16xf32>
    %51 = arith.truncf %50 : vector<4x16x16xf32> to vector<4x16x16xbf16>
    %52 = vector.extract_strided_slice %51 {offsets = [0, 0, 0], sizes = [1, 16, 16], strides = [1, 1, 1]} : vector<4x16x16xbf16> to vector<1x16x16xbf16>
    %53 = vector.shape_cast %52 : vector<1x16x16xbf16> to vector<16x16xbf16>
    %54 = vector.extract_strided_slice %18 {offsets = [0, 0], sizes = [16, 32], strides = [1, 1]} : vector<16x128xbf16> to vector<16x32xbf16>
    %cst_20 = arith.constant dense<0.000000e+00> : vector<16x32xf32>
    %55 = tpu.matmul %53, %54, %cst_20 {dimension_numbers = #tpu.dot_dimension_numbers<[1], [0], [0], [1], [0, 0, 1, 1], [], []>} : vector<16x16xbf16>, vector<16x32xbf16>, vector<16x32xf32> -> vector<16x32xf32>
    %56 = vector.extract_strided_slice %51 {offsets = [1, 0, 0], sizes = [1, 16, 16], strides = [1, 1, 1]} : vector<4x16x16xbf16> to vector<1x16x16xbf16>
    %57 = vector.shape_cast %56 : vector<1x16x16xbf16> to vector<16x16xbf16>
    %58 = vector.extract_strided_slice %18 {offsets = [0, 32], sizes = [16, 32], strides = [1, 1]} : vector<16x128xbf16> to vector<16x32xbf16>
    %cst_21 = arith.constant dense<0.000000e+00> : vector<16x32xf32>
    %59 = tpu.matmul %57, %58, %cst_21 {dimension_numbers = #tpu.dot_dimension_numbers<[1], [0], [0], [1], [0, 0, 1, 1], [], []>} : vector<16x16xbf16>, vector<16x32xbf16>, vector<16x32xf32> -> vector<16x32xf32>
    %60 = vector.extract_strided_slice %51 {offsets = [2, 0, 0], sizes = [1, 16, 16], strides = [1, 1, 1]} : vector<4x16x16xbf16> to vector<1x16x16xbf16>
    %61 = vector.shape_cast %60 : vector<1x16x16xbf16> to vector<16x16xbf16>
    %62 = vector.extract_strided_slice %18 {offsets = [0, 64], sizes = [16, 32], strides = [1, 1]} : vector<16x128xbf16> to vector<16x32xbf16>
    %cst_22 = arith.constant dense<0.000000e+00> : vector<16x32xf32>
    %63 = tpu.matmul %61, %62, %cst_22 {dimension_numbers = #tpu.dot_dimension_numbers<[1], [0], [0], [1], [0, 0, 1, 1], [], []>} : vector<16x16xbf16>, vector<16x32xbf16>, vector<16x32xf32> -> vector<16x32xf32>
    %64 = vector.extract_strided_slice %51 {offsets = [3, 0, 0], sizes = [1, 16, 16], strides = [1, 1, 1]} : vector<4x16x16xbf16> to vector<1x16x16xbf16>
    %65 = vector.shape_cast %64 : vector<1x16x16xbf16> to vector<16x16xbf16>
    %66 = vector.extract_strided_slice %18 {offsets = [0, 96], sizes = [16, 32], strides = [1, 1]} : vector<16x128xbf16> to vector<16x32xbf16>
    %cst_23 = arith.constant dense<0.000000e+00> : vector<16x32xf32>
    %67 = tpu.matmul %65, %66, %cst_23 {dimension_numbers = #tpu.dot_dimension_numbers<[1], [0], [0], [1], [0, 0, 1, 1], [], []>} : vector<16x16xbf16>, vector<16x32xbf16>, vector<16x32xf32> -> vector<16x32xf32>
    %68 = tpu.concatenate %55, %59, %63, %67 in 1 : vector<16x32xf32>, vector<16x32xf32>, vector<16x32xf32>, vector<16x32xf32> -> vector<16x128xf32>
    %69 = arith.addf %68, %17 : vector<16x128xf32>
    %c0_24 = arith.constant 0 : index
    %c0_25 = arith.constant 0 : index
    %70 = vector.load %arg7[%c0_24, %c0_25] : memref<1x128xf32, #tpu.memory_space<vmem>>, vector<1x128xf32>
    %71 = vector.broadcast %70 : vector<1x128xf32> to vector<16x128xf32>
    %72 = arith.addf %69, %71 : vector<16x128xf32>
    %cst_26 = arith.constant dense<0.000000e+00> : vector<16xf32>
    %73 = vector.multi_reduction <add>, %72, %cst_26 [1] : vector<16x128xf32> to vector<16xf32>
    %74 = vector.shape_cast %73 : vector<16xf32> to vector<16x1xf32>
    %cst_27 = arith.constant 1.280000e+02 : f32
    %75 = vector.broadcast %cst_27 : f32 to vector<16x1xf32>
    %76 = arith.divf %74, %75 : vector<16x1xf32>
    %77 = vector.broadcast %76 : vector<16x1xf32> to vector<16x128xf32>
    %78 = arith.subf %72, %77 : vector<16x128xf32>
    %79 = arith.mulf %78, %78 : vector<16x128xf32>
    %cst_28 = arith.constant dense<0.000000e+00> : vector<16xf32>
    %80 = vector.multi_reduction <add>, %79, %cst_28 [1] : vector<16x128xf32> to vector<16xf32>
    %81 = vector.shape_cast %80 : vector<16xf32> to vector<16x1xf32>
    %cst_29 = arith.constant 1.280000e+02 : f32
    %82 = vector.broadcast %cst_29 : f32 to vector<16x1xf32>
    %83 = arith.divf %81, %82 : vector<16x1xf32>
    %84 = vector.broadcast %76 : vector<16x1xf32> to vector<16x128xf32>
    %85 = arith.subf %72, %84 : vector<16x128xf32>
    %cst_30 = arith.constant 9.99999974E-6 : f32
    %86 = vector.broadcast %cst_30 : f32 to vector<16x1xf32>
    %87 = arith.addf %83, %86 : vector<16x1xf32>
    %88 = math.rsqrt %87 : vector<16x1xf32>
    %89 = vector.broadcast %88 : vector<16x1xf32> to vector<16x128xf32>
    %90 = arith.mulf %85, %89 : vector<16x128xf32>
    %c0_31 = arith.constant 0 : index
    %c0_32 = arith.constant 0 : index
    %91 = vector.load %arg8[%c0_31, %c0_32] : memref<1x128xf32, #tpu.memory_space<vmem>>, vector<1x128xf32>
    %92 = vector.broadcast %91 : vector<1x128xf32> to vector<16x128xf32>
    %93 = arith.mulf %90, %92 : vector<16x128xf32>
    %c0_33 = arith.constant 0 : index
    %c0_34 = arith.constant 0 : index
    %94 = vector.load %arg9[%c0_33, %c0_34] : memref<1x128xf32, #tpu.memory_space<vmem>>, vector<1x128xf32>
    %95 = vector.broadcast %94 : vector<1x128xf32> to vector<16x128xf32>
    %96 = arith.addf %93, %95 : vector<16x128xf32>
    %cst_35 = arith.constant 0.000000e+00 : f32
    %97 = vector.broadcast %cst_35 : f32 to vector<16x128xf32>
    %98 = arith.maximumf %96, %97 : vector<16x128xf32>
    %99 = arith.truncf %98 : vector<16x128xf32> to vector<16x128xbf16>
    %c0_36 = arith.constant 0 : index
    %c0_37 = arith.constant 0 : index
    %100 = vector.load %arg10[%c0_36, %c0_37] : memref<128x256xbf16, #tpu.memory_space<vmem>>, vector<128x256xbf16>
    %cst_38 = arith.constant dense<0.000000e+00> : vector<16x256xf32>
    %101 = tpu.matmul %99, %100, %cst_38 {dimension_numbers = #tpu.dot_dimension_numbers<[1], [0], [0], [1], [0, 0, 1, 1], [], []>} : vector<16x128xbf16>, vector<128x256xbf16>, vector<16x256xf32> -> vector<16x256xf32>
    %102 = vector.extract_strided_slice %101 {offsets = [0, 0], sizes = [16, 128], strides = [1, 1]} : vector<16x256xf32> to vector<16x128xf32>
    %103 = vector.extract_strided_slice %101 {offsets = [0, 128], sizes = [16, 128], strides = [1, 1]} : vector<16x256xf32> to vector<16x128xf32>
    %104 = arith.truncf %102 : vector<16x128xf32> to vector<16x128xbf16>
    %c0_39 = arith.constant 0 : index
    %c0_40 = arith.constant 0 : index
    %105 = vector.load %arg11[%c0_39, %c0_40] : memref<8x128xbf16, #tpu.memory_space<vmem>>, vector<8x128xbf16>
    %cst_41 = arith.constant dense<0.000000e+00> : vector<8x16xf32>
    %106 = tpu.matmul %105, %104, %cst_41 {dimension_numbers = #tpu.dot_dimension_numbers<[1], [1], [0], [0], [0, 0, 1, 0], [], []>} : vector<8x128xbf16>, vector<16x128xbf16>, vector<8x16xf32> -> vector<8x16xf32>
    %107 = vector.extract_strided_slice %106 {offsets = [0, 0], sizes = [4, 16], strides = [1, 1]} : vector<8x16xf32> to vector<4x16xf32>
    %108 = vector.extract_strided_slice %106 {offsets = [4, 0], sizes = [4, 16], strides = [1, 1]} : vector<8x16xf32> to vector<4x16xf32>
    %109 = vector.shape_cast %108 : vector<4x16xf32> to vector<4x16x1xf32>
    %110 = vector.shape_cast %107 : vector<4x16xf32> to vector<4x1x16xf32>
    %111 = vector.broadcast %109 : vector<4x16x1xf32> to vector<4x16x16xf32>
    %112 = vector.broadcast %110 : vector<4x1x16xf32> to vector<4x16x16xf32>
    %113 = arith.addf %111, %112 : vector<4x16x16xf32>
    %cst_42 = arith.constant 2.000000e-01 : f32
    %114 = vector.broadcast %cst_42 : f32 to vector<4x16x16xf32>
    %115 = arith.mulf %114, %113 : vector<4x16x16xf32>
    %116 = arith.maximumf %113, %115 : vector<4x16x16xf32>
    %117 = vector.shape_cast %5 : vector<16x16xf32> to vector<1x16x16xf32>
    %118 = vector.broadcast %117 : vector<1x16x16xf32> to vector<4x16x16xf32>
    %119 = arith.addf %116, %118 : vector<4x16x16xf32>
    %cst_43 = arith.constant dense<0xFF800000> : vector<4x16xf32>
    %120 = vector.multi_reduction <maximumf>, %119, %cst_43 [2] : vector<4x16x16xf32> to vector<4x16xf32>
    %121 = vector.shape_cast %120 : vector<4x16xf32> to vector<4x16x1xf32>
    %122 = vector.broadcast %121 : vector<4x16x1xf32> to vector<4x16x16xf32>
    %123 = arith.subf %119, %122 : vector<4x16x16xf32>
    %124 = math.exp %123 : vector<4x16x16xf32>
    %125 = vector.shape_cast %1 : vector<16x16xf32> to vector<1x16x16xf32>
    %126 = vector.broadcast %125 : vector<1x16x16xf32> to vector<4x16x16xf32>
    %127 = arith.mulf %124, %126 : vector<4x16x16xf32>
    %cst_44 = arith.constant dense<0.000000e+00> : vector<4x16xf32>
    %128 = vector.multi_reduction <add>, %127, %cst_44 [2] : vector<4x16x16xf32> to vector<4x16xf32>
    %129 = vector.shape_cast %128 : vector<4x16xf32> to vector<4x16x1xf32>
    %cst_45 = arith.constant 0.000000e+00 : f32
    %130 = vector.broadcast %cst_45 : f32 to vector<4x16x1xf32>
    %131 = arith.cmpf ogt, %129, %130 : vector<4x16x1xf32>
    %cst_46 = arith.constant 1.000000e+00 : f32
    %132 = vector.broadcast %cst_46 : f32 to vector<4x16x1xf32>
    %133 = arith.select %131, %129, %132 : vector<4x16x1xi1>, vector<4x16x1xf32>
    %134 = tpu.reciprocal %133 {approx = true} : vector<4x16x1xf32> -> vector<4x16x1xf32>
    %135 = vector.broadcast %134 : vector<4x16x1xf32> to vector<4x16x16xf32>
    %136 = arith.mulf %127, %135 : vector<4x16x16xf32>
    %137 = arith.truncf %136 : vector<4x16x16xf32> to vector<4x16x16xbf16>
    %138 = vector.extract_strided_slice %137 {offsets = [0, 0, 0], sizes = [1, 16, 16], strides = [1, 1, 1]} : vector<4x16x16xbf16> to vector<1x16x16xbf16>
    %139 = vector.shape_cast %138 : vector<1x16x16xbf16> to vector<16x16xbf16>
    %140 = vector.extract_strided_slice %104 {offsets = [0, 0], sizes = [16, 32], strides = [1, 1]} : vector<16x128xbf16> to vector<16x32xbf16>
    %cst_47 = arith.constant dense<0.000000e+00> : vector<16x32xf32>
    %141 = tpu.matmul %139, %140, %cst_47 {dimension_numbers = #tpu.dot_dimension_numbers<[1], [0], [0], [1], [0, 0, 1, 1], [], []>} : vector<16x16xbf16>, vector<16x32xbf16>, vector<16x32xf32> -> vector<16x32xf32>
    %142 = vector.extract_strided_slice %137 {offsets = [1, 0, 0], sizes = [1, 16, 16], strides = [1, 1, 1]} : vector<4x16x16xbf16> to vector<1x16x16xbf16>
    %143 = vector.shape_cast %142 : vector<1x16x16xbf16> to vector<16x16xbf16>
    %144 = vector.extract_strided_slice %104 {offsets = [0, 32], sizes = [16, 32], strides = [1, 1]} : vector<16x128xbf16> to vector<16x32xbf16>
    %cst_48 = arith.constant dense<0.000000e+00> : vector<16x32xf32>
    %145 = tpu.matmul %143, %144, %cst_48 {dimension_numbers = #tpu.dot_dimension_numbers<[1], [0], [0], [1], [0, 0, 1, 1], [], []>} : vector<16x16xbf16>, vector<16x32xbf16>, vector<16x32xf32> -> vector<16x32xf32>
    %146 = vector.extract_strided_slice %137 {offsets = [2, 0, 0], sizes = [1, 16, 16], strides = [1, 1, 1]} : vector<4x16x16xbf16> to vector<1x16x16xbf16>
    %147 = vector.shape_cast %146 : vector<1x16x16xbf16> to vector<16x16xbf16>
    %148 = vector.extract_strided_slice %104 {offsets = [0, 64], sizes = [16, 32], strides = [1, 1]} : vector<16x128xbf16> to vector<16x32xbf16>
    %cst_49 = arith.constant dense<0.000000e+00> : vector<16x32xf32>
    %149 = tpu.matmul %147, %148, %cst_49 {dimension_numbers = #tpu.dot_dimension_numbers<[1], [0], [0], [1], [0, 0, 1, 1], [], []>} : vector<16x16xbf16>, vector<16x32xbf16>, vector<16x32xf32> -> vector<16x32xf32>
    %150 = vector.extract_strided_slice %137 {offsets = [3, 0, 0], sizes = [1, 16, 16], strides = [1, 1, 1]} : vector<4x16x16xbf16> to vector<1x16x16xbf16>
    %151 = vector.shape_cast %150 : vector<1x16x16xbf16> to vector<16x16xbf16>
    %152 = vector.extract_strided_slice %104 {offsets = [0, 96], sizes = [16, 32], strides = [1, 1]} : vector<16x128xbf16> to vector<16x32xbf16>
    %cst_50 = arith.constant dense<0.000000e+00> : vector<16x32xf32>
    %153 = tpu.matmul %151, %152, %cst_50 {dimension_numbers = #tpu.dot_dimension_numbers<[1], [0], [0], [1], [0, 0, 1, 1], [], []>} : vector<16x16xbf16>, vector<16x32xbf16>, vector<16x32xf32> -> vector<16x32xf32>
    %154 = tpu.concatenate %141, %145, %149, %153 in 1 : vector<16x32xf32>, vector<16x32xf32>, vector<16x32xf32>, vector<16x32xf32> -> vector<16x128xf32>
    %155 = arith.addf %154, %103 : vector<16x128xf32>
    %c0_51 = arith.constant 0 : index
    %c0_52 = arith.constant 0 : index
    %156 = vector.load %arg12[%c0_51, %c0_52] : memref<1x128xf32, #tpu.memory_space<vmem>>, vector<1x128xf32>
    %157 = vector.broadcast %156 : vector<1x128xf32> to vector<16x128xf32>
    %158 = arith.addf %155, %157 : vector<16x128xf32>
    %159 = arith.truncf %158 : vector<16x128xf32> to vector<16x128xbf16>
    %c0_53 = arith.constant 0 : index
    %c0_54 = arith.constant 0 : index
    %160 = vector.load %arg13[%c0_53, %c0_54] : memref<128x32xbf16, #tpu.memory_space<vmem>>, vector<128x32xbf16>
    %cst_55 = arith.constant dense<0.000000e+00> : vector<16x32xf32>
    %161 = tpu.matmul %159, %160, %cst_55 {dimension_numbers = #tpu.dot_dimension_numbers<[1], [0], [0], [1], [0, 0, 1, 1], [], []>} : vector<16x128xbf16>, vector<128x32xbf16>, vector<16x32xf32> -> vector<16x32xf32>
    %c0_56 = arith.constant 0 : index
    %c0_57 = arith.constant 0 : index
    %162 = vector.load %arg14[%c0_56, %c0_57] : memref<1x32xf32, #tpu.memory_space<vmem>>, vector<1x32xf32>
    %163 = vector.broadcast %162 : vector<1x32xf32> to vector<16x32xf32>
    %164 = arith.addf %161, %163 : vector<16x32xf32>
    %cst_58 = arith.constant 0.000000e+00 : f32
    %165 = vector.broadcast %cst_58 : f32 to vector<16x32xf32>
    %166 = arith.maximumf %164, %165 : vector<16x32xf32>
    %167 = arith.truncf %166 : vector<16x32xf32> to vector<16x32xbf16>
    %c0_59 = arith.constant 0 : index
    %c0_60 = arith.constant 0 : index
    %168 = vector.load %arg15[%c0_59, %c0_60] : memref<32x48xbf16, #tpu.memory_space<vmem>>, vector<32x48xbf16>
    %cst_61 = arith.constant dense<0.000000e+00> : vector<16x48xf32>
    %169 = tpu.matmul %167, %168, %cst_61 {dimension_numbers = #tpu.dot_dimension_numbers<[1], [0], [0], [1], [0, 0, 1, 1], [], []>} : vector<16x32xbf16>, vector<32x48xbf16>, vector<16x48xf32> -> vector<16x48xf32>
    %c0_62 = arith.constant 0 : index
    %c0_63 = arith.constant 0 : index
    %170 = vector.load %arg16[%c0_62, %c0_63] : memref<1x48xf32, #tpu.memory_space<vmem>>, vector<1x48xf32>
    %171 = vector.broadcast %170 : vector<1x48xf32> to vector<16x48xf32>
    %172 = arith.addf %169, %171 : vector<16x48xf32>
    %173 = arith.truncf %172 : vector<16x48xf32> to vector<16x48xbf16>
    %c0_64 = arith.constant 0 : index
    %c0_65 = arith.constant 0 : index
    %174 = vector.load %arg17[%c0_64, %c0_65] : memref<48x16xbf16, #tpu.memory_space<vmem>>, vector<48x16xbf16>
    %cst_66 = arith.constant dense<0.000000e+00> : vector<16x16xf32>
    %175 = tpu.matmul %173, %174, %cst_66 {dimension_numbers = #tpu.dot_dimension_numbers<[1], [0], [0], [1], [0, 0, 1, 1], [], []>} : vector<16x48xbf16>, vector<48x16xbf16>, vector<16x16xf32> -> vector<16x16xf32>
    %c0_67 = arith.constant 0 : index
    %c0_68 = arith.constant 0 : index
    %176 = vector.load %arg18[%c0_67, %c0_68] : memref<1x16xf32, #tpu.memory_space<vmem>>, vector<1x16xf32>
    %177 = vector.broadcast %176 : vector<1x16xf32> to vector<16x16xf32>
    %178 = arith.addf %175, %177 : vector<16x16xf32>
    %cst_69 = arith.constant 0.000000e+00 : f32
    %179 = vector.broadcast %cst_69 : f32 to vector<16x80xf32>
    %180 = tpu.concatenate %178, %166, %179 in 1 : vector<16x16xf32>, vector<16x32xf32>, vector<16x80xf32> -> vector<16x128xf32>
    %c0_70 = arith.constant 0 : index
    %c0_71 = arith.constant 0 : index
    %181 = vector.load %arg19[%c0_70, %c0_71] : memref<16x128xf32, #tpu.memory_space<vmem>>, vector<16x128xf32>
    tpu.vector_store %arg19[%c0_70, %c0_71], %180 {strides = array<i32>} : memref<16x128xf32, #tpu.memory_space<vmem>>, vector<16x128xf32>,
    return
  }
  func.func @transform_0(%arg0: i32) -> (i32, i32) {
    %c0_i32 = arith.constant 0 : i32
    %c0_i32_0 = arith.constant 0 : i32
    %c0_i32_1 = arith.constant 0 : i32
    return %c0_i32, %c0_i32_0 : i32, i32
  }
  func.func @transform_1(%arg0: i32) -> (i32, i32) {
    %c0_i32 = arith.constant 0 : i32
    %c0_i32_0 = arith.constant 0 : i32
    %c0_i32_1 = arith.constant 0 : i32
    return %c0_i32, %c0_i32_0 : i32, i32
  }
  func.func @transform_2(%arg0: i32) -> (i32, i32) {
    %c0_i32 = arith.constant 0 : i32
    %c0_i32_0 = arith.constant 0 : i32
    %c0_i32_1 = arith.constant 0 : i32
    return %c0_i32, %c0_i32_0 : i32, i32
  }
  func.func @transform_3(%arg0: i32) -> (i32, i32) {
    %c0_i32 = arith.constant 0 : i32
    %c0_i32_0 = arith.constant 0 : i32
    %c0_i32_1 = arith.constant 0 : i32
    return %c0_i32, %c0_i32_0 : i32, i32
  }
  func.func @transform_4(%arg0: i32) -> (i32, i32) {
    %c0_i32 = arith.constant 0 : i32
    %c0_i32_0 = arith.constant 0 : i32
    %c0_i32_1 = arith.constant 0 : i32
    return %c0_i32, %c0_i32_0 : i32, i32
  }
  func.func @transform_5(%arg0: i32) -> (i32, i32) {
    %c0_i32 = arith.constant 0 : i32
    %c0_i32_0 = arith.constant 0 : i32
    %c0_i32_1 = arith.constant 0 : i32
    return %c0_i32, %c0_i32_0 : i32, i32
  }
  func.func @transform_6(%arg0: i32) -> (i32, i32) {
    %c0_i32 = arith.constant 0 : i32
    %c0_i32_0 = arith.constant 0 : i32
    %c0_i32_1 = arith.constant 0 : i32
    return %c0_i32, %c0_i32_0 : i32, i32
  }
  func.func @transform_7(%arg0: i32) -> (i32, i32) {
    %c0_i32 = arith.constant 0 : i32
    %c0_i32_0 = arith.constant 0 : i32
    %c0_i32_1 = arith.constant 0 : i32
    return %c0_i32, %c0_i32_0 : i32, i32
  }
  func.func @transform_8(%arg0: i32) -> (i32, i32) {
    %c0_i32 = arith.constant 0 : i32
    %c0_i32_0 = arith.constant 0 : i32
    %c0_i32_1 = arith.constant 0 : i32
    return %c0_i32, %c0_i32_0 : i32, i32
  }
  func.func @transform_9(%arg0: i32) -> (i32, i32) {
    %c0_i32 = arith.constant 0 : i32
    %c0_i32_0 = arith.constant 0 : i32
    %c0_i32_1 = arith.constant 0 : i32
    return %c0_i32, %c0_i32_0 : i32, i32
  }
  func.func @transform_10(%arg0: i32) -> (i32, i32) {
    %c0_i32 = arith.constant 0 : i32
    %c0_i32_0 = arith.constant 0 : i32
    %c0_i32_1 = arith.constant 0 : i32
    return %c0_i32, %c0_i32_0 : i32, i32
  }
  func.func @transform_11(%arg0: i32) -> (i32, i32) {
    %c0_i32 = arith.constant 0 : i32
    %c0_i32_0 = arith.constant 0 : i32
    %c0_i32_1 = arith.constant 0 : i32
    return %c0_i32, %c0_i32_0 : i32, i32
  }
  func.func @transform_12(%arg0: i32) -> (i32, i32) {
    %c0_i32 = arith.constant 0 : i32
    %c0_i32_0 = arith.constant 0 : i32
    %c0_i32_1 = arith.constant 0 : i32
    return %c0_i32, %c0_i32_0 : i32, i32
  }
  func.func @transform_13(%arg0: i32) -> (i32, i32) {
    %c0_i32 = arith.constant 0 : i32
    %c0_i32_0 = arith.constant 0 : i32
    %c0_i32_1 = arith.constant 0 : i32
    return %c0_i32, %c0_i32_0 : i32, i32
  }
  func.func @transform_14(%arg0: i32) -> (i32, i32) {
    %c0_i32 = arith.constant 0 : i32
    %c0_i32_0 = arith.constant 0 : i32
    %c0_i32_1 = arith.constant 0 : i32
    return %c0_i32, %c0_i32_0 : i32, i32
  }
  func.func @transform_15(%arg0: i32) -> (i32, i32) {
    %c0_i32 = arith.constant 0 : i32
    %c0_i32_0 = arith.constant 0 : i32
    %c0_i32_1 = arith.constant 0 : i32
    return %c0_i32, %c0_i32_0 : i32, i32
  }
  func.func @transform_16(%arg0: i32) -> (i32, i32) {
    %c0_i32 = arith.constant 0 : i32
    %c0_i32_0 = arith.constant 0 : i32
    %c0_i32_1 = arith.constant 0 : i32
    return %c0_i32, %c0_i32_0 : i32, i32
  }
  func.func @transform_17(%arg0: i32) -> (i32, i32) {
    %c0_i32 = arith.constant 0 : i32
    %c0_i32_0 = arith.constant 0 : i32
    %c0_i32_1 = arith.constant 0 : i32
    return %c0_i32, %c0_i32_0 : i32, i32
  }
  func.func @transform_18(%arg0: i32) -> (i32, i32) {
    %c0_i32 = arith.constant 0 : i32
    %c0_i32_0 = arith.constant 0 : i32
    %c0_i32_1 = arith.constant 0 : i32
    return %c0_i32, %c0_i32_0 : i32, i32
  }
}

</mosaic_0001>

<bundles_post_ra>
// kernel: forward.1
= control target key start
LH: loop header
LB: loop body
LE: loop exit
PB: predicated region body
PF: predicated region fallthrough
CT: control target
= control target key end

     0   :  { %s3137_s0 = inlined_call_operand.vmem [shape: f32[16,16], index: 0, kind: input, shape index: {}]   ;;  %s3138_s1 = inlined_call_operand.hbm [shape: s8[16,16], index: 1, kind: input, shape index: {}]   ;;  %s3139_s2 = inlined_call_operand.vmem [shape: bf16[16,48], index: 2, kind: input, shape index: {}]   ;;  %s3140_s3 = inlined_call_operand.hbm [shape: f32[1,48], index: 3, kind: input, shape index: {}]   ;;  %s3141_s4 = inlined_call_operand.hbm [shape: bf16[48,256], index: 4, kind: input, shape index: {}]   ;;  %s3142_s5 = inlined_call_operand.hbm [shape: bf16[8,128], index: 5, kind: input, shape index: {}]   ;;  %s3143_s6 = inlined_call_operand.hbm [shape: f32[1,128], index: 6, kind: input, shape index: {}]   ;;  %s3144_s7 = inlined_call_operand.hbm [shape: f32[1,128], index: 7, kind: input, shape index: {}]   ;;  %s3145_s8 = inlined_call_operand.hbm [shape: f32[1,128], index: 8, kind: input, shape index: {}]   ;;  %s3146_s9 = inlined_call_operand.vmem [shape: bf16[128,256], index: 9, kind: input, shape index: {}]   ;;  %s3147_s10 = inlined_call_operand.hbm [shape: bf16[8,128], index: 10, kind: input, shape index: {}]   ;;  %s3148_s11 = inlined_call_operand.hbm [shape: f32[1,128], index: 11, kind: input, shape index: {}]   ;;  %s3149_s12 = inlined_call_operand.vmem [shape: bf16[128,32], index: 12, kind: input, shape index: {}]   ;;  %s3150_s13 = inlined_call_operand.hbm [shape: f32[1,32], index: 13, kind: input, shape index: {}]   ;;  %s3151_s14 = inlined_call_operand.vmem [shape: bf16[32,48], index: 14, kind: input, shape index: {}]   ;;  %s3152_s15 = inlined_call_operand.hbm [shape: f32[1,48], index: 15, kind: input, shape index: {}]   ;;  %s3153_s16 = inlined_call_operand.vmem [shape: bf16[48,16], index: 16, kind: input, shape index: {}]   ;;  %s3154_s17 = inlined_call_operand.hbm [shape: f32[1,16], index: 17, kind: input, shape index: {}]   ;;  %s3155_s18 = inlined_call_operand.vmem [shape: f32[16,128], index: 18, kind: output, shape index: {}]  }
   0x1   :  { %3158 = sst [smem:[#allocation28_spill]] %s3137_s0 }
   0x2   :  { %3159 = sst [smem:[#allocation29_spill]] %s3138_s1 }
   0x3   :  { %3160 = sst [smem:[#allocation30_spill]] %s3139_s2 }
   0x4   :  { %23 = vsyncpa [#allocation3], 0 }
   0x5   :  { %24 = vsyncpa [#allocation5], 0 }
   0x6   :  { %25 = vsyncpa [#allocation8], 0 }
   0x7   :  { %26 = vsyncpa [#allocation11], 0 }
   0x8   :  { %27 = vsyncpa [#allocation14], 0 }
   0x9   :  { %28 = vsyncpa [#allocation17], 0 }
   0xa   :  { %29 = vsyncpa [#allocation20], 0  ;;  %s2462_s27 = smov [#allocation4]   ;;  %s2463_s29 = smov [#allocation7]  }
   0xb   :  { %s52_s28 = sshll.u32 %s2462_s27, 4  ;;  %s74_s30 = sshll.u32 %s2463_s29, 4  ;;  %s53_s28 = int_to_ptr.vmem [resolvable:$true] %s52_s28  ;;  %s75_s30 = int_to_ptr.vmem [resolvable:$true] %s74_s30 }
   0xc   :  { %s2184_s1 = scalar_lea.hbm %s3140_s3, 16 }
   0xd   :  { %p2185_p0 = scmp.ne.s32.totalorder %s3140_s3, %s2184_s1  ;;  %p2188_p1 = scmp.lt.u32.totalorder %s2184_s1, %s3140_s3 }
   0xf   :  { %p2190_p2 = pnand %p2188_p1, %p2185_p0 }
  0x11   :  { %2193 = shalt.err (!%p2190_p2)
}
  0x12   :  { %s2194_s23 = scalar_lea.vmem %s53_s28, 16  ;;  %s2198_s24 = scalar_lea.vmem %s53_s28, 32 }
  0x13   :  { %p2195_p3 = scmp.ne.s32.totalorder %s53_s28, %s2194_s23  ;;  %p2199_p4 = scmp.lt.s32.totalorder %s53_s28, %s53_s28 }
  0x14   :  { %p2200_p5 = scmp.lt.s32.totalorder %s2198_s24, %s2194_s23 }
  0x16   :  { %p2201_p6 = por %p2200_p5, %p2199_p4 }
  0x18   :  { %p2202_p7 = pnand %p2201_p6, %p2195_p3 }
  0x1a   :  { %2205 = shalt.err (!%p2202_p7)
}
  0x1b   :  { %55 = dma.hbm_to_vmem [thread:$0]  %s3140_s3, 16, %s53_s28, [#allocation5]  }
  0x1c   :  { %s2206_s0 = scalar_lea.hbm %s3142_s5, 64 }
  0x1d   :  { %p2207_p8 = scmp.ne.s32.totalorder %s3142_s5, %s2206_s0  ;;  %p2210_p9 = scmp.lt.u32.totalorder %s2206_s0, %s3142_s5 }
  0x1f   :  { %p2212_p10 = pnand %p2210_p9, %p2207_p8 }
  0x21   :  { %2215 = shalt.err (!%p2212_p10)
}
  0x22   :  { %s2216_s22 = scalar_lea.vmem %s75_s30, 64  ;;  %p2221_p12 = scmp.lt.s32.totalorder %s75_s30, %s75_s30 }
  0x23   :  { %p2217_p11 = scmp.ne.s32.totalorder %s75_s30, %s2216_s22  ;;  %p2222_p13 = scmp.lt.s32.totalorder %s2216_s22, %s2216_s22 }
  0x25   :  { %p2223_p0 = por %p2222_p13, %p2221_p12 }
  0x27   :  { %p2224_p1 = pnand %p2223_p0, %p2217_p11 }
  0x29   :  { %2227 = shalt.err (!%p2224_p1)
}
  0x2a   :  { %77 = dma.hbm_to_vmem [thread:$0]  %s3142_s5, 64, %s75_s30, [#allocation8]  }
  0x2b   :  { %s2464_s2 = smov [#allocation10]   ;;  %s2465_s24 = smov [#allocation13]  }
  0x2c   :  { %s94_s23 = sshll.u32 %s2464_s2, 4  ;;  %s116_s25 = sshll.u32 %s2465_s24, 4  ;;  %s95_s23 = int_to_ptr.vmem [resolvable:$true] %s94_s23  ;;  %s117_s25 = int_to_ptr.vmem [resolvable:$true] %s116_s25 }
  0x2d   :  { %s2228_s29 = scalar_lea.hbm %s3144_s7, 16 }
  0x2e   :  { %p2229_p2 = scmp.ne.s32.totalorder %s3144_s7, %s2228_s29  ;;  %p2232_p3 = scmp.lt.u32.totalorder %s2228_s29, %s3144_s7 }
  0x30   :  { %p2234_p4 = pnand %p2232_p3, %p2229_p2 }
  0x32   :  { %2237 = shalt.err (!%p2234_p4)
}
  0x33   :  { %s2238_s5 = scalar_lea.vmem %s95_s23, 16  ;;  %s2242_s30 = scalar_lea.vmem %s95_s23, 32 }
  0x34   :  { %p2239_p5 = scmp.ne.s32.totalorder %s95_s23, %s2238_s5  ;;  %p2243_p6 = scmp.lt.s32.totalorder %s95_s23, %s95_s23 }
  0x35   :  { %p2244_p7 = scmp.lt.s32.totalorder %s2242_s30, %s2238_s5 }
  0x37   :  { %p2245_p8 = por %p2244_p7, %p2243_p6 }
  0x39   :  { %p2246_p9 = pnand %p2245_p8, %p2239_p5 }
  0x3b   :  { %2249 = shalt.err (!%p2246_p9)
}
  0x3c   :  { %97 = dma.hbm_to_vmem [thread:$0]  %s3144_s7, 16, %s95_s23, [#allocation11]  }
  0x3d   :  { %s2250_s2 = scalar_lea.hbm %s3147_s10, 64 }
  0x3e   :  { %p2251_p10 = scmp.ne.s32.totalorder %s3147_s10, %s2250_s2  ;;  %p2254_p11 = scmp.lt.u32.totalorder %s2250_s2, %s3147_s10 }
  0x40   :  { %p2256_p12 = pnand %p2254_p11, %p2251_p10 }
  0x42   :  { %2259 = shalt.err (!%p2256_p12)
}
  0x43   :  { %s2260_s0 = scalar_lea.vmem %s117_s25, 64  ;;  %p2265_p0 = scmp.lt.s32.totalorder %s117_s25, %s117_s25 }
  0x44   :  { %p2261_p13 = scmp.ne.s32.totalorder %s117_s25, %s2260_s0  ;;  %p2266_p1 = scmp.lt.s32.totalorder %s2260_s0, %s2260_s0 }
  0x46   :  { %p2267_p2 = por %p2266_p1, %p2265_p0 }
  0x48   :  { %p2268_p3 = pnand %p2267_p2, %p2261_p13 }
  0x4a   :  { %2271 = shalt.err (!%p2268_p3)
}
  0x4b   :  { %119 = dma.hbm_to_vmem [thread:$0]  %s3147_s10, 64, %s117_s25, [#allocation14]  }
  0x4c   :  { %s2466_s19 = smov [#allocation16]   ;;  %s2467_s20 = smov [#allocation2]  }
  0x4d   :  { %s138_s1 = sshll.u32 %s2466_s19, 4  ;;  %s37_s5 = sshll.u32 %s2467_s20, 4  ;;  %s139_s1 = int_to_ptr.vmem [resolvable:$true] %s138_s1  ;;  %s2628_s5 = int_to_ptr.vmem [resolvable:$true] %s37_s5 }
  0x4e   :  { %s2272_s22 = scalar_lea.hbm %s3150_s13, 16 }
  0x4f   :  { %p2273_p4 = scmp.ne.s32.totalorder %s3150_s13, %s2272_s22  ;;  %p2276_p5 = scmp.lt.u32.totalorder %s2272_s22, %s3150_s13 }
  0x51   :  { %p2278_p6 = pnand %p2276_p5, %p2273_p4 }
  0x53   :  { %2281 = shalt.err (!%p2278_p6)
}
  0x54   :  { %s2282_s10 = scalar_lea.vmem %s139_s1, 16  ;;  %s2286_s25 = scalar_lea.vmem %s139_s1, 32 }
  0x55   :  { %p2283_p7 = scmp.ne.s32.totalorder %s139_s1, %s2282_s10  ;;  %p2287_p8 = scmp.lt.s32.totalorder %s139_s1, %s139_s1 }
  0x56   :  { %p2288_p9 = scmp.lt.s32.totalorder %s2286_s25, %s2282_s10 }
  0x58   :  { %p2289_p10 = por %p2288_p9, %p2287_p8 }
  0x5a   :  { %p2290_p11 = pnand %p2289_p10, %p2283_p7 }
  0x5c   :  { %2293 = shalt.err (!%p2290_p11)
}
  0x5d   :  { %141 = dma.hbm_to_vmem [thread:$0]  %s3150_s13, 16, %s139_s1, [#allocation17]  }
  0x5e   :  { %s3161_s7 = sld [smem:[#allocation29_spill]] }
  0x64   :  { %s2294_s23 = scalar_lea.hbm %s3161_s7, 64 }
  0x65   :  { %p2295_p12 = scmp.ne.s32.totalorder %s3161_s7, %s2294_s23  ;;  %p2298_p13 = scmp.lt.u32.totalorder %s2294_s23, %s3161_s7 }
  0x67   :  { %p2300_p0 = pnand %p2298_p13, %p2295_p12 }
  0x69   :  { %2303 = shalt.err (!%p2300_p0)
}
  0x6a   :  { %s2304_s22 = scalar_lea.vmem %s2628_s5, 64  ;;  %p2309_p2 = scmp.lt.s32.totalorder %s2628_s5, %s2628_s5 }
  0x6b   :  { %p2305_p1 = scmp.ne.s32.totalorder %s2628_s5, %s2304_s22  ;;  %p2310_p3 = scmp.lt.s32.totalorder %s2304_s22, %s2304_s22 }
  0x6d   :  { %p2311_p4 = por %p2310_p3, %p2309_p2 }
  0x6f   :  { %p2312_p5 = pnand %p2311_p4, %p2305_p1 }
  0x71   :  { %2315 = shalt.err (!%p2312_p5)
}
  0x72   :  { %s2468_s13 = smov 32   ;;  %s2469_s1 = smov 2  }
  0x73   :  { %43 = dma.hbm_to_vmem [thread:$0]  %s3161_s7, 64, %s2628_s5, [#allocation3], %s2468_s13, %s2468_s13, %s2469_s1  }
  0x74   :  { %s2470_s2 = smov [#allocation6]   ;;  %s2316_s26 = scalar_lea.hbm %s3141_s4, 768 }
  0x75   :  { %s61_s24 = sshll.u32 %s2470_s2, 4  ;;  %p2317_p6 = scmp.ne.s32.totalorder %s3141_s4, %s2316_s26  ;;  %s62_s24 = int_to_ptr.vmem [resolvable:$true] %s61_s24 }
  0x76   :  { %p2320_p7 = scmp.lt.u32.totalorder %s2316_s26, %s3141_s4 }
  0x78   :  { %p2322_p8 = pnand %p2320_p7, %p2317_p6 }
  0x7a   :  { %2325 = shalt.err (!%p2322_p8)
}
  0x7b   :  { %s2326_s19 = scalar_lea.vmem %s62_s24, 768  ;;  %p2331_p10 = scmp.lt.s32.totalorder %s62_s24, %s62_s24 }
  0x7c   :  { %p2327_p9 = scmp.ne.s32.totalorder %s62_s24, %s2326_s19  ;;  %p2332_p11 = scmp.lt.s32.totalorder %s2326_s19, %s2326_s19 }
  0x7e   :  { %p2333_p12 = por %p2332_p11, %p2331_p10 }
  0x80   :  { %p2334_p13 = pnand %p2333_p12, %p2327_p9 }
  0x82   :  { %2337 = shalt.err (!%p2334_p13)
}
  0x83   :  { %s2471_s5 = smov 128   ;;  %s2472_s7 = smov 8  }
  0x84   :  { %67 = dma.hbm_to_vmem [thread:$0]  %s3141_s4, 768, %s62_s24, [#allocation5], %s2471_s5, %s2471_s5, %s2472_s7  }
  0x85   :  { %s2473_s21 = smov [#allocation9]   ;;  %s2474_s1 = smov [#allocation12]  }
  0x86   :  { %s84_s22 = sshll.u32 %s2473_s21, 4  ;;  %s104_s3 = sshll.u32 %s2474_s1, 4  ;;  %s85_s22 = int_to_ptr.vmem [resolvable:$true] %s84_s22  ;;  %s105_s3 = int_to_ptr.vmem [resolvable:$true] %s104_s3 }
  0x87   :  { %s2338_s10 = scalar_lea.hbm %s3143_s6, 16 }
  0x88   :  { %p2339_p0 = scmp.ne.s32.totalorder %s3143_s6, %s2338_s10  ;;  %p2342_p1 = scmp.lt.u32.totalorder %s2338_s10, %s3143_s6 }
  0x8a   :  { %p2344_p2 = pnand %p2342_p1, %p2339_p0 }
  0x8c   :  { %2347 = shalt.err (!%p2344_p2)
}
  0x8d   :  { %s2348_s4 = scalar_lea.vmem %s85_s22, 16  ;;  %s2352_s24 = scalar_lea.vmem %s85_s22, 32 }
  0x8e   :  { %p2349_p3 = scmp.ne.s32.totalorder %s85_s22, %s2348_s4  ;;  %p2353_p4 = scmp.lt.s32.totalorder %s85_s22, %s85_s22 }
  0x8f   :  { %p2354_p5 = scmp.lt.s32.totalorder %s2352_s24, %s2348_s4 }
  0x91   :  { %p2355_p6 = por %p2354_p5, %p2353_p4 }
  0x93   :  { %p2356_p7 = pnand %p2355_p6, %p2349_p3 }
  0x95   :  { %2359 = shalt.err (!%p2356_p7)
}
  0x96   :  { %87 = dma.hbm_to_vmem [thread:$0]  %s3143_s6, 16, %s85_s22, [#allocation8]  }
  0x97   :  { %s2360_s7 = scalar_lea.hbm %s3145_s8, 16 }
  0x98   :  { %p2361_p8 = scmp.ne.s32.totalorder %s3145_s8, %s2360_s7  ;;  %p2364_p9 = scmp.lt.u32.totalorder %s2360_s7, %s3145_s8 }
  0x9a   :  { %p2366_p10 = pnand %p2364_p9, %p2361_p8 }
  0x9c   :  { %2369 = shalt.err (!%p2366_p10)
}
  0x9d   :  { %s2370_s28 = scalar_lea.vmem %s105_s3, 16  ;;  %s2374_s2 = scalar_lea.vmem %s105_s3, 32 }
  0x9e   :  { %p2371_p11 = scmp.ne.s32.totalorder %s105_s3, %s2370_s28  ;;  %p2375_p12 = scmp.lt.s32.totalorder %s105_s3, %s105_s3 }
  0x9f   :  { %p2376_p13 = scmp.lt.s32.totalorder %s2374_s2, %s2370_s28 }
  0xa1   :  { %p2377_p0 = por %p2376_p13, %p2375_p12 }
  0xa3   :  { %p2378_p1 = pnand %p2377_p0, %p2371_p11 }
  0xa5   :  { %2381 = shalt.err (!%p2378_p1)
}
  0xa6   :  { %107 = dma.hbm_to_vmem [thread:$0]  %s3145_s8, 16, %s105_s3, [#allocation11]  }
  0xa7   :  { %s2475_s10 = smov [#allocation15]   ;;  %s2476_s26 = smov [#allocation18]  }
  0xa8   :  { %s126_s25 = sshll.u32 %s2475_s10, 4  ;;  %s150_s27 = sshll.u32 %s2476_s26, 4  ;;  %s127_s25 = int_to_ptr.vmem [resolvable:$true] %s126_s25  ;;  %s151_s27 = int_to_ptr.vmem [resolvable:$true] %s150_s27 }
  0xa9   :  { %s2382_s24 = scalar_lea.hbm %s3148_s11, 16 }
  0xaa   :  { %p2383_p2 = scmp.ne.s32.totalorder %s3148_s11, %s2382_s24  ;;  %p2386_p3 = scmp.lt.u32.totalorder %s2382_s24, %s3148_s11 }
  0xac   :  { %p2388_p4 = pnand %p2386_p3, %p2383_p2 }
  0xae   :  { %2391 = shalt.err (!%p2388_p4)
}
  0xaf   :  { %s2392_s8 = scalar_lea.vmem %s127_s25, 16  ;;  %s2396_s3 = scalar_lea.vmem %s127_s25, 32 }
  0xb0   :  { %p2393_p5 = scmp.ne.s32.totalorder %s127_s25, %s2392_s8  ;;  %p2397_p6 = scmp.lt.s32.totalorder %s127_s25, %s127_s25 }
  0xb1   :  { %p2398_p7 = scmp.lt.s32.totalorder %s2396_s3, %s2392_s8 }
  0xb3   :  { %p2399_p8 = por %p2398_p7, %p2397_p6 }
  0xb5   :  { %p2400_p9 = pnand %p2399_p8, %p2393_p5 }
  0xb7   :  { %2403 = shalt.err (!%p2400_p9)
}
  0xb8   :  { %129 = dma.hbm_to_vmem [thread:$0]  %s3148_s11, 16, %s127_s25, [#allocation14]  }
  0xb9   :  { %s2404_s1 = scalar_lea.hbm %s3152_s15, 16 }
  0xba   :  { %p2405_p10 = scmp.ne.s32.totalorder %s3152_s15, %s2404_s1  ;;  %p2408_p11 = scmp.lt.u32.totalorder %s2404_s1, %s3152_s15 }
  0xbc   :  { %p2410_p12 = pnand %p2408_p11, %p2405_p10 }
  0xbe   :  { %2413 = shalt.err (!%p2410_p12)
}
  0xbf   :  { %s2414_s10 = scalar_lea.vmem %s151_s27, 16  ;;  %s2418_s26 = scalar_lea.vmem %s151_s27, 32 }
  0xc0   :  { %p2415_p13 = scmp.ne.s32.totalorder %s151_s27, %s2414_s10  ;;  %p2419_p0 = scmp.lt.s32.totalorder %s151_s27, %s151_s27 }
  0xc1   :  { %p2420_p1 = scmp.lt.s32.totalorder %s2418_s26, %s2414_s10 }
  0xc3   :  { %p2421_p2 = por %p2420_p1, %p2419_p0 }
  0xc5   :  { %p2422_p3 = pnand %p2421_p2, %p2415_p13 }
  0xc7   :  { %2425 = shalt.err (!%p2422_p3)
}
  0xc8   :  { %153 = dma.hbm_to_vmem [thread:$0]  %s3152_s15, 16, %s151_s27, [#allocation17]  }
  0xc9   :  { %s2477_s29 = smov [#allocation19]   ;;  %s2426_s23 = scalar_lea.hbm %s3154_s17, 16 }
  0xca   :  { %s162_s4 = sshll.u32 %s2477_s29, 4  ;;  %p2427_p4 = scmp.ne.s32.totalorder %s3154_s17, %s2426_s23  ;;  %s163_s4 = int_to_ptr.vmem [resolvable:$true] %s162_s4 }
  0xcb   :  { %p2430_p5 = scmp.lt.u32.totalorder %s2426_s23, %s3154_s17 }
  0xcd   :  { %p2432_p6 = pnand %p2430_p5, %p2427_p4 }
  0xcf   :  { %2435 = shalt.err (!%p2432_p6)
}
  0xd0   :  { %s2436_s7 = scalar_lea.vmem %s163_s4, 16  ;;  %s2440_s15 = scalar_lea.vmem %s163_s4, 32 }
  0xd1   :  { %p2437_p7 = scmp.ne.s32.totalorder %s163_s4, %s2436_s7  ;;  %p2441_p8 = scmp.lt.s32.totalorder %s163_s4, %s163_s4 }
  0xd2   :  { %p2442_p9 = scmp.lt.s32.totalorder %s2440_s15, %s2436_s7 }
  0xd4   :  { %p2443_p10 = por %p2442_p9, %p2441_p8 }
  0xd6   :  { %p2444_p11 = pnand %p2443_p10, %p2437_p7 }
  0xd8   :  { %2447 = shalt.err (!%p2444_p11)
}
  0xd9   :  { %165 = dma.hbm_to_vmem [thread:$0]  %s3154_s17, 16, %s163_s4, [#allocation20]  }
  0xda   :  { %2448 = dma.done.wait [#allocation3], 64  }
  0xdb   :  { %2449 = vsyncadd [#allocation3], 4294967232 }
  0xdc   :  { %2450 = dma.done.wait [#allocation5], 784  }
  0xdd   :  { %2451 = vsyncadd [#allocation5], 4294966512 }
  0xde   :  { %2452 = dma.done.wait [#allocation8], 80  }
  0xdf   :  { %2453 = vsyncadd [#allocation8], 4294967216 }
  0xe0   :  { %2454 = dma.done.wait [#allocation11], 32  }
  0xe1   :  { %2455 = vsyncadd [#allocation11], 4294967264 }
  0xe2   :  { %2456 = dma.done.wait [#allocation14], 80  }
  0xe3   :  { %2457 = vsyncadd [#allocation14], 4294967216 }
  0xe4   :  { %2458 = dma.done.wait [#allocation17], 32  }
  0xe5   :  { %2459 = vsyncadd [#allocation17], 4294967264 }
  0xe6   :  { %2460 = dma.done.wait [#allocation20], 16  }
  0xe7   :  { %2461 = vsyncadd [#allocation20], 4294967280  ;;  %v2478_v0 = vmov 0.0   ;;  %vm2479_vm0 = vmmov 0   ;;  %s3162_s21 = sld [smem:[#allocation30_spill]]  ;;  %s3163_s2 = sld [smem:[#allocation28_spill]]  ;;  %v402_v26 = vlaneseq }
  0xe8   :  { %1942 = vmatprep.subr.bf16.mxu0 %v2478_v0  ;;  %1944 = vmatprep.mubr.msk.bf16.mxu0 %vm2479_vm0, %v2478_v0  ;;  %vm231_vm1 = vcmask 130048   ;;  %v2070_v5 = vld [vmem:[#allocation6 + $0x4] ss:$8 sps:$4 sm:$0xff]   ;;  %v2072_v6 = vld [vmem:[#allocation6] ss:$8 sps:$4 sm:$0xff]   ;;  %v2480_v11 = vmov 0  }
  0xe9   :  { %v2073_v7 = vld [vmem:[#allocation6 + $0x14] ss:$8 sps:$4 sm:$0xff]   ;;  %317 = vmatprep.subr.bf16.mxu1 %v2070_v5  ;;  %v2075_v8 = vld [vmem:[#allocation6 + $0x10] ss:$8 sps:$4 sm:$0xff]   ;;  %v2076_v9 = vld [vmem:[#allocation6 + $0x24] ss:$8 sps:$4 sm:$0xff]   ;;  %349 = vmatprep.mubr.bf16.mxu1 %v2480_v11 }
  0xea   :  { %318 = vmatpush1.bf16.msra.mxu1 %v2072_v6  ;;  %v2078_v10 = vld [vmem:[#allocation6 + $0x20] ss:$8 sps:$4 sm:$0xff]   ;;  %v1844_v12 = vld [vmem:[#allocation4] ss:$0 sm:$0xff]  ;;  %vm313_vm2 = vcmask 392192   ;;  %v2766_v27 = vshrl.u32 %v402_v26, 7 }
  0xeb   :  { %319 = vmatprep.subr.bf16.mxu1 %v2073_v7  ;;  %v361_v25 = vld [vmem:[#allocation7] sm:$0xf]  ;;  %v2481_v40 = vmov 1966171168   ;;  %v1901_v45 = vld [vmem:[#allocation2] sm:$0xf]  }
  0xec   :  { %v415_v28 = vsub.s32 5, %v2766_v27  ;;  %v404_v29 = vsub.s32 4, %v2766_v27  ;;  %v426_v36 = vsub.s32 6, %v2766_v27  ;;  %v437_v38 = vsub.s32 7, %v2766_v27  ;;  %s2482_s10 = smov 96   ;;  %s2483_s26 = smov 64  }
  0xed   :  { %v2069_v1 = vld [vmem:[%s3162_s21] sm:$0xff]   ;;  %v214_v3 = vld [vmem:[%s3163_s2 + $0x8] sm:$0xff]  ;;  %v448_v41 = vunpack.c.l.s4 %v2481_v40  ;;  %v1902_v47 = vunpack.c.0.s8 %v1901_v45  ;;  %v1903_v48 = vunpack.c.1.s8 %v1901_v45  ;;  %v2786_v50 = vsub.s32 0, %v2766_v27  ;;  %s2484_s25 = smov 16  }
  0xee   :  { %v213_v2 = vld [vmem:[%s3163_s2] sm:$0xff]  ;;  %1943 = vmatpush3.bf16.msra.mxu0 %v2069_v1  ;;  %320 = vmatpush1.bf16.msra.mxu1 %v2075_v8  ;;  %vm849_vm11 = vcmask 261120   ;;  %vm852_vm12 = vcmask 523264   ;;  %vm855_vm13 = vcmask 785408  }
  0xef   :  { %v215_v4 = vpack.c.bf16 %v214_v3, %v213_v2  ;;  %1948 = vmatprep.subr.bf16.mxu0 %v2478_v0  ;;  %321 = vmatprep.subr.bf16.mxu1 %v2076_v9  ;;  %v449_v42 = vunpack.c.0.s8 %v448_v41  ;;  %v2789_v52 = vcvt.s32.f32 %v1902_v47  ;;  %v2791_v53 = vcvt.s32.f32 %v1903_v48 }
  0xf1   :  { %1945 = vmatmul.mubr.msk.bf16.vlgmr.msra.gmra.mrb[0].mxu0 %vm231_vm1, %v215_v4  ;;  %v2781_v43 = vsub.s32 %v449_v42, %v2766_v27  ;;  %v1842_v56 = vadd.f32 -1.0, %v2789_v52  ;;  %v1843_v62 = vadd.f32 -1.0, %v2791_v53 }
  0xf2   :  { %1950 = vmatprep.mubr.msk.bf16.mxu0 %vm2479_vm0, %v2478_v0  ;;  %322 = vmatpush1.bf16.msra.mxu1 %v2078_v10 }
  0xf3   :  { %1960 = vmatprep.subr.bf16.mxu1 %v2478_v0  ;;  %v2797_v2 = vmul.f32 1e+30, %v1842_v56  ;;  %v2800_v10 = vmul.f32 1e+30, %v1843_v62 }
 0x1c4   :  { %v269_v13 = vpop.f32.mrb[0].mxu0 }
 0x1c5   :  { %v1946_v14 = vpop.f32.mrb[1].mxu0  ;;  %v270_v16 = vadd.f32 %v1844_v12, %v269_v13 }
 0x1c6   :  { %v272_v15 = vpop.f32.mrb[2].mxu0 }
 0x1c7   :  { %v273_v17 = vadd.f32 %v1844_v12, %v272_v15  ;;  %v1947_v18 = vpop.f32.mrb[3].mxu0 }
 0x1c9   :  { %v276_v19 = vpack.c.bf16 %v273_v17, %v270_v16 }
 0x1cb   :  { %1853 = vmatmul.mubr.msk.bf16.vlgmr.msra.gmra.mrb[0].mxu1 %vm313_vm2, %v276_v19 }
 0x1cc   :  { %1962 = vmatprep.mubr.msk.bf16.mxu1 %vm2479_vm0, %v2478_v0 }
 0x29e   :  { %v351_v20 = vpop.f32.mrb[0].mxu1 }
 0x29f   :  { %v2754_v21 = vpop.f32.mrb[1].mxu1 }
 0x2a0   :  { %v355_v22 = vpop.f32.mrb[2].mxu1 }
 0x2a1   :  { %v2756_v23 = vpack.c.bf16 %v355_v22, %v351_v20  ;;  %v2758_v24 = vpop.f32.mrb[3].mxu1 }
 0x2a3   :  { %1949 = vmatpush3.bf16.xpose.msra.mxu0 %v2756_v23 }
 0x2a4   :  { %1954 = vmatprep.subr.bf16.mxu0 %v2478_v0 }
 0x2aa   :  { %1951 = vmatmul.mubr.bf16.vlgmr.msra.gmra.mrb[4].mxu0 %v361_v25 }
 0x2ab   :  { %1955 = vmatpush3.bf16.msra.mxu0 %v2756_v23  ;;  %1956 = vmatprep.mubr.msk.bf16.mxu0 %vm2479_vm0, %v2478_v0 }
 0x2ac   :  { %1966 = vmatprep.subr.bf16.mxu0 %v2478_v0 }
 0x37d   :  { %v396_v30 = vpop.f32.mrb[4].mxu0 }
 0x37e   :  { %v1952_v31 = vpop.f32.mrb[5].mxu0  ;;  %v416_v32 = vrot.slane %v396_v30, %v415_v28  ;;  %v405_v33 = vrot.slane %v396_v30, %v404_v29  ;;  %v427_v37 = vrot.slane %v396_v30, %v426_v36  ;;  %v438_v39 = vrot.slane %v396_v30, %v437_v38 }
 0x37f   :  { %v399_v34 = vpop.f32.mrb[6].mxu0  ;;  %v453_v44 = vrot.slane %v396_v30, %v2781_v43 }
 0x380   :  { %418 = vbcast.lane.b32.xlu1 %v416_v32, 256  ;;  %407 = vbcast.lane.b32.xlu0 %v405_v33, 256  ;;  %v1953_v35 = vpop.f32.mrb[7].mxu0 }
 0x381   :  { %v454_v46 = vcombine.high %v453_v44, %v453_v44  ;;  %v461_v51 = vrot.slane %v453_v44, %v2781_v43 }
 0x383   :  { %v468_v49 = vrot.slane %v454_v46, %v2781_v43  ;;  %v474_v55 = vrot.slane %v461_v51, %v2786_v50  ;;  %v469_v61 = vcombine.high %v461_v51, %v461_v51 }
 0x384   :  { %422 = vbcast.lane.b32.xlu1 %v416_v32, 264  ;;  %411 = vbcast.lane.b32.xlu0 %v405_v33, 264 }
 0x385   :  { %v478_v54 = vrot.slane %v468_v49, %v2786_v50  ;;  %v482_v9 = vrot.slane %v469_v61, %v2786_v50  ;;  %v470_v15 = vcombine.high %v468_v49, %v468_v49 }
 0x387   :  { %v486_v32 = vrot.slane %v470_v15, %v2786_v50 }
 0x388   :  { %433 = vbcast.lane.b32.xlu1 %v427_v37, 264  ;;  %429 = vbcast.lane.b32.xlu0 %v427_v37, 256 }
 0x38c   :  { %444 = vbcast.lane.b32.xlu1 %v438_v39, 264  ;;  %440 = vbcast.lane.b32.xlu0 %v438_v39, 256 }
 0x3f2   :  { %v419_v57 = vpop.permute.xlu1 %418  ;;  %v408_v58 = vpop.permute.xlu0 %407 }
 0x3f3   :  { %v493_v59 = vadd.f32 %v478_v54, %v419_v57  ;;  %v491_v60 = vadd.f32 %v474_v55, %v408_v58 }
 0x3f5   :  { %v501_v63 = vmul.f32 0.2, %v493_v59  ;;  %v499_v1 = vmul.f32 0.2, %v491_v60 }
 0x3f6   :  { %v423_v3 = vpop.permute.xlu1 %422  ;;  %v412_v4 = vpop.permute.xlu0 %411 }
 0x3f7   :  { %v507_v5 = vmax.f32 %v491_v60, %v499_v1  ;;  %v494_v6 = vadd.f32 %v478_v54, %v423_v3  ;;  %v492_v7 = vadd.f32 %v474_v55, %v412_v4  ;;  %v509_v8 = vmax.f32 %v493_v59, %v501_v63 }
 0x3f9   :  { %v502_v12 = vmul.f32 0.2, %v494_v6  ;;  %v500_v13 = vmul.f32 0.2, %v492_v7  ;;  %v515_v14 = vadd.f32 %v507_v5, %v2797_v2  ;;  %v517_v26 = vadd.f32 %v509_v8, %v2797_v2 }
 0x3fa   :  { %v434_v16 = vpop.permute.xlu1 %433  ;;  %v430_v17 = vpop.permute.xlu0 %429 }
 0x3fb   :  { %v508_v18 = vmax.f32 %v492_v7, %v500_v13  ;;  %v496_v19 = vadd.f32 %v482_v9, %v434_v16  ;;  %v495_v20 = vadd.f32 %v482_v9, %v430_v17  ;;  %v510_v22 = vmax.f32 %v494_v6, %v502_v12 }
 0x3fc   :  { %v523_v25 = vsel %vm231_vm1, %v515_v14, -inf  ;;  %v529_v44 = vsel %vm231_vm1, %v517_v26, -inf }
 0x3fd   :  { %v504_v30 = vmul.f32 0.2, %v496_v19  ;;  %v503_v31 = vmul.f32 0.2, %v495_v20  ;;  %524 = vmax.xlane.f32.xlu0 %v523_v25  ;;  %v516_v33 = vadd.f32 %v508_v18, %v2800_v10  ;;  %v518_v45 = vadd.f32 %v510_v22, %v2800_v10 }
 0x3fe   :  { %v445_v34 = vpop.permute.xlu1 %444  ;;  %v441_v35 = vpop.permute.xlu0 %440 }
 0x3ff   :  { %v511_v37 = vmax.f32 %v495_v20, %v503_v31  ;;  %v498_v39 = vadd.f32 %v486_v32, %v445_v34  ;;  %v497_v40 = vadd.f32 %v486_v32, %v441_v35  ;;  %v512_v41 = vmax.f32 %v496_v19, %v504_v30 }
 0x400   :  { %v526_v42 = vsel %vm231_vm1, %v516_v33, -inf  ;;  %v532_v55 = vsel %vm231_vm1, %v518_v45, -inf }
 0x401   :  { %v506_v46 = vmul.f32 0.2, %v498_v39  ;;  %v505_v47 = vmul.f32 0.2, %v497_v40  ;;  %527 = vmax.xlane.f32.xlu1 %v526_v42  ;;  %530 = vmax.xlane.f32.xlu0 %v529_v44  ;;  %v519_v48 = vadd.f32 %v511_v37, %v2797_v2  ;;  %v520_v56 = vadd.f32 %v512_v41, %v2800_v10 }
 0x403   :  { %v513_v49 = vmax.f32 %v497_v40, %v505_v47  ;;  %v535_v51 = vsel %vm231_vm1, %v519_v48, -inf  ;;  %v514_v54 = vmax.f32 %v498_v39, %v506_v46  ;;  %v538_v59 = vsel %vm231_vm1, %v520_v56, -inf }
 0x405   :  { %536 = vmax.xlane.f32.xlu1 %v535_v51  ;;  %533 = vmax.xlane.f32.xlu0 %v532_v55  ;;  %v521_v57 = vadd.f32 %v513_v49, %v2797_v2  ;;  %v522_v60 = vadd.f32 %v514_v54, %v2800_v10 }
 0x407   :  { %v541_v58 = vsel %vm231_vm1, %v521_v57, -inf  ;;  %v544_v61 = vsel %vm231_vm1, %v522_v60, -inf }
 0x409   :  { %542 = vmax.xlane.f32.xlu1 %v541_v58  ;;  %539 = vmax.xlane.f32.xlu0 %v538_v59 }
 0x40d   :  { %545 = vmax.xlane.f32.xlu0 %v544_v61 }
 0x41a   :  { %684 = vrot.lane.b32.xlu1 %v2756_v23, %s2482_s10 }
 0x48a   :  { %v525_v62 = vpop.xlane.xlu0 %524 }
 0x48b   :  { %v547_v63 = vsub.f32 %v515_v14, %v525_v62 }
 0x48d   :  { %v555_v1 = vmul.f32 1.442695, %v547_v63 }
 0x48e   :  { %v528_v3 = vpop.xlane.xlu1 %527  ;;  %v531_v4 = vpop.xlane.xlu0 %530 }
 0x48f   :  { %2116 = vpow2.f32 %v555_v1  ;;  %v548_v5 = vsub.f32 %v516_v33, %v528_v3  ;;  %v549_v6 = vsub.f32 %v517_v26, %v531_v4 }
 0x491   :  { %v557_v7 = vmul.f32 1.442695, %v548_v5  ;;  %v559_v8 = vmul.f32 1.442695, %v549_v6 }
 0x492   :  { %v537_v9 = vpop.xlane.xlu1 %536  ;;  %v534_v12 = vpop.xlane.xlu0 %533 }
 0x493   :  { %2118 = vpow2.f32 %v557_v7  ;;  %v551_v13 = vsub.f32 %v519_v48, %v537_v9  ;;  %v550_v15 = vsub.f32 %v518_v45, %v534_v12 }
 0x494   :  { %2120 = vpow2.f32 %v559_v8 }
 0x495   :  { %v563_v16 = vmul.f32 1.442695, %v551_v13  ;;  %v561_v17 = vmul.f32 1.442695, %v550_v15 }
 0x496   :  { %v543_v18 = vpop.xlane.xlu1 %542  ;;  %v540_v19 = vpop.xlane.xlu0 %539 }
 0x497   :  { %2122 = vpow2.f32 %v563_v16  ;;  %v553_v14 = vsub.f32 %v521_v57, %v543_v18  ;;  %v552_v20 = vsub.f32 %v520_v56, %v540_v19 }
 0x498   :  { %2124 = vpow2.f32 %v561_v17 }
 0x499   :  { %v2117_v22 = vpop.eup %2116  ;;  %v567_v25 = vmul.f32 1.442695, %v553_v14  ;;  %v565_v30 = vmul.f32 1.442695, %v552_v20 }
 0x49a   :  { %v685_v26 = vpop.permute.xlu1 %684  ;;  %v546_v31 = vpop.xlane.xlu0 %545  ;;  %v2822_v32 = vmul.f32 %v2117_v22, %v2789_v52 }
 0x49b   :  { %2126 = vpow2.f32 %v567_v25  ;;  %v554_v33 = vsub.f32 %v522_v60, %v546_v31  ;;  %1961 = vmatpush3.bf16.msra.mxu1 %v685_v26 }
 0x49c   :  { %2128 = vpow2.f32 %v565_v30  ;;  %v579_v34 = vsel %vm231_vm1, %v2822_v32, 0.0  ;;  %1972 = vmatprep.subr.bf16.mxu1 %v2478_v0 }
 0x49d   :  { %v2119_v35 = vpop.eup %2118  ;;  %v569_v37 = vmul.f32 1.442695, %v554_v33  ;;  %580 = vadd.xlane.f32.xlu1 %v579_v34 }
 0x49e   :  { %v2121_v39 = vpop.eup %2120  ;;  %v572_v40 = vmul.f32 %v2119_v35, %v2791_v53 }
 0x49f   :  { %2130 = vpow2.f32 %v569_v37  ;;  %v2829_v41 = vmul.f32 %v2121_v39, %v2789_v52 }
 0x4a0   :  { %v582_v42 = vsel %vm231_vm1, %v572_v40, 0.0 }
 0x4a1   :  { %v2123_v44 = vpop.eup %2122  ;;  %583 = vadd.xlane.f32.xlu0 %v582_v42  ;;  %v585_v45 = vsel %vm231_vm1, %v2829_v41, 0.0 }
 0x4a2   :  { %v2125_v46 = vpop.eup %2124  ;;  %586 = vadd.xlane.f32.xlu1 %v585_v45  ;;  %v2835_v47 = vmul.f32 %v2123_v44, %v2789_v52 }
 0x4a3   :  { %v2838_v48 = vmul.f32 %v2125_v46, %v2791_v53 }
 0x4a4   :  { %v591_v49 = vsel %vm231_vm1, %v2835_v47, 0.0 }
 0x4a5   :  { %v2127_v51 = vpop.eup %2126  ;;  %v588_v54 = vsel %vm231_vm1, %v2838_v48, 0.0 }
 0x4a6   :  { %v2129_v55 = vpop.eup %2128  ;;  %592 = vadd.xlane.f32.xlu1 %v591_v49  ;;  %589 = vadd.xlane.f32.xlu0 %v588_v54  ;;  %v2845_v56 = vmul.f32 %v2127_v51, %v2789_v52 }
 0x4a7   :  { %v576_v57 = vmul.f32 %v2129_v55, %v2791_v53 }
 0x4a8   :  { %v597_v58 = vsel %vm231_vm1, %v2845_v56, 0.0 }
 0x4a9   :  { %v2131_v59 = vpop.eup %2130  ;;  %v594_v60 = vsel %vm231_vm1, %v576_v57, 0.0 }
 0x4aa   :  { %598 = vadd.xlane.f32.xlu1 %v597_v58  ;;  %595 = vadd.xlane.f32.xlu0 %v594_v60  ;;  %v2852_v61 = vmul.f32 %v2131_v59, %v2791_v53 }
 0x4ac   :  { %v600_v62 = vsel %vm231_vm1, %v2852_v61, 0.0 }
 0x4ae   :  { %601 = vadd.xlane.f32.xlu0 %v600_v62 }
 0x4bb   :  { %778 = vrot.lane.b32.xlu1 %v2756_v23, %s2468_s13 }
 0x4c4   :  { %731 = vrot.lane.b32.xlu0 %v2756_v23, %s2483_s26 }
 0x52a   :  { %v581_v63 = vpop.xlane.xlu1 %580 }
 0x52b   :  { %vm603_vm3 = vcmp.gt.f32.partialorder %v581_v63, 0.0 }
 0x52c   :  { %v611_v1 = vsel %vm603_vm3, %v581_v63, 1.0 }
 0x52d   :  { %2132 = vrcp.f32 %v611_v1 }
 0x52e   :  { %v584_v3 = vpop.xlane.xlu0 %583 }
 0x52f   :  { %v587_v4 = vpop.xlane.xlu1 %586  ;;  %vm604_vm4 = vcmp.gt.f32.partialorder %v584_v3, 0.0 }
 0x530   :  { %vm605_vm5 = vcmp.gt.f32.partialorder %v587_v4, 0.0  ;;  %v612_v5 = vsel %vm604_vm4, %v584_v3, 1.0 }
 0x531   :  { %2134 = vrcp.f32 %v612_v5  ;;  %v613_v6 = vsel %vm605_vm5, %v587_v4, 1.0 }
 0x532   :  { %2136 = vrcp.f32 %v613_v6 }
 0x533   :  { %v593_v7 = vpop.xlane.xlu1 %592  ;;  %v590_v8 = vpop.xlane.xlu0 %589 }
 0x534   :  { %vm607_vm6 = vcmp.gt.f32.partialorder %v593_v7, 0.0  ;;  %vm606_vm7 = vcmp.gt.f32.partialorder %v590_v8, 0.0 }
 0x535   :  { %v614_v9 = vsel %vm606_vm7, %v590_v8, 1.0  ;;  %v615_v12 = vsel %vm607_vm6, %v593_v7, 1.0 }
 0x536   :  { %2138 = vrcp.f32 %v614_v9 }
 0x537   :  { %v599_v23 = vpop.xlane.xlu1 %598  ;;  %v596_v13 = vpop.xlane.xlu0 %595  ;;  %2140 = vrcp.f32 %v615_v12 }
 0x538   :  { %vm609_vm8 = vcmp.gt.f32.partialorder %v599_v23, 0.0  ;;  %vm608_vm9 = vcmp.gt.f32.partialorder %v596_v13, 0.0  ;;  %v2133_v15 = vpop.eup %2132 }
 0x539   :  { %v617_v16 = vsel %vm609_vm8, %v599_v23, 1.0  ;;  %v616_v17 = vsel %vm608_vm9, %v596_v13, 1.0  ;;  %v627_v14 = vmul.f32 %v2133_v15, %v2822_v32 }
 0x53a   :  { %2142 = vrcp.f32 %v616_v17 }
 0x53b   :  { %v2135_v18 = vpop.eup %2134  ;;  %v602_v19 = vpop.xlane.xlu0 %601  ;;  %2144 = vrcp.f32 %v617_v16  ;;  %v1858_v16 = vld [vmem:[#allocation9] ss:$0 sm:$0xff] }
 0x53c   :  { %v628_v20 = vmul.f32 %v2135_v18, %v572_v40  ;;  %vm610_vm10 = vcmp.gt.f32.partialorder %v602_v19, 0.0  ;;  %v2137_v30 = vpop.eup %2136  ;;  %v779_v44 = vpop.permute.xlu1 %778 }
 0x53d   :  { %v618_v22 = vsel %vm610_vm10, %v602_v19, 1.0  ;;  %v629_v33 = vmul.f32 %v2137_v30, %v2829_v41  ;;  %v2079_v30 = vld [vmem:[%s3146_s9] ss:$8 sps:$4 sm:$0xff]  }
 0x53e   :  { %2146 = vrcp.f32 %v618_v22  ;;  %v635_v25 = vpack.c.bf16 %v628_v20, %v627_v14 }
 0x53f   :  { %v732_v26 = vpop.permute.xlu0 %731 }
 0x540   :  { %1957 = vmatmul.mubr.msk.bf16.vlgmr.msra.gmra.mrb[8].mxu0 %vm231_vm1, %v635_v25  ;;  %v2139_v31 = vpop.eup %2138 }
 0x541   :  { %1967 = vmatpush3.bf16.msra.mxu0 %v732_v26  ;;  %1968 = vmatprep.mubr.msk.bf16.mxu0 %vm2479_vm0, %v2478_v0  ;;  %v630_v34 = vmul.f32 %v2139_v31, %v2838_v48  ;;  %v2141_v32 = vpop.eup %2140  ;;  %v2081_v26 = vld [vmem:[%s3146_s9 + $0x4] ss:$8 sps:$4 sm:$0xff]  }
 0x542   :  { %v631_v40 = vmul.f32 %v2141_v32, %v2835_v47  ;;  %1009 = vmatprep.subr.bf16.mxu0 %v2081_v26 }
 0x543   :  { %v636_v35 = vpack.c.bf16 %v630_v34, %v629_v33 }
 0x544   :  { %v2143_v37 = vpop.eup %2142 }
 0x545   :  { %v2145_v39 = vpop.eup %2144  ;;  %v632_v42 = vmul.f32 %v2143_v37, %v576_v57  ;;  %1963 = vmatmul.mubr.msk.bf16.vlgmr.msra.gmra.mrb[4].mxu1 %vm231_vm1, %v636_v35 }
 0x546   :  { %1973 = vmatpush3.bf16.msra.mxu1 %v779_v44  ;;  %1974 = vmatprep.mubr.msk.bf16.mxu1 %vm2479_vm0, %v2478_v0  ;;  %v633_v41 = vmul.f32 %v2145_v39, %v2845_v56  ;;  %v2085_v44 = vld [vmem:[%s3146_s9 + $0x20] ss:$8 sps:$4 sm:$0xff]  }
 0x547   :  { %v637_v46 = vpack.c.bf16 %v632_v42, %v631_v40  ;;  %1978 = vmatprep.subr.bf16.mxu1 %v2478_v0  ;;  %v2087_v42 = vld [vmem:[%s3146_s9 + $0x24] ss:$8 sps:$4 sm:$0xff]  }
 0x548   :  { %v2147_v45 = vpop.eup %2146 }
 0x549   :  { %v634_v48 = vmul.f32 %v2147_v45, %v2852_v61  ;;  %1969 = vmatmul.mubr.msk.bf16.vlgmr.msra.gmra.mrb[12].mxu0 %vm231_vm1, %v637_v46  ;;  %v2090_v45 = vld [vmem:[%s3146_s9 + $0x34] ss:$8 sps:$4 sm:$0xff]   ;;  %v2088_v46 = vld [vmem:[%s3146_s9 + $0x30] ss:$8 sps:$4 sm:$0xff]  }
 0x54a   :  { %1041 = vmatprep.mubr.bf16.mxu0 %v2480_v11  ;;  %1010 = vmatpush1.bf16.msra.mxu0 %v2079_v30 }
 0x54b   :  { %v638_v49 = vpack.c.bf16 %v634_v48, %v633_v41  ;;  %v2093_v41 = vld [vmem:[%s3146_s9 + $0x44] ss:$8 sps:$4 sm:$0xff]   ;;  %v2091_v48 = vld [vmem:[%s3146_s9 + $0x40] ss:$8 sps:$4 sm:$0xff]  }
 0x54d   :  { %1975 = vmatmul.mubr.msk.bf16.vlgmr.msra.gmra.mrb[8].mxu1 %vm231_vm1, %v638_v49  ;;  %v2096_v49 = vld [vmem:[%s3146_s9 + $0x54] ss:$8 sps:$4 sm:$0xff]  }
 0x54e   :  { %1980 = vmatprep.mubr.msk.bf16.mxu1 %vm2479_vm0, %v2478_v0 }
 0x613   :  { %v676_v47 = vpop.f32.mrb[8].mxu0 }
 0x614   :  { %v1958_v51 = vpop.f32.mrb[9].mxu0 }
 0x615   :  { %v679_v54 = vpop.f32.mrb[10].mxu0  ;;  %v2097_v51 = vld [vmem:[%s3146_s9 + $0x60] ss:$8 sps:$4 sm:$0xff]  }
 0x616   :  { %v1959_v55 = vpop.f32.mrb[11].mxu0 }
 0x617   :  { %v2102_v55 = vld [vmem:[%s3146_s9 + $0x74] ss:$8 sps:$4 sm:$0xff]  }
 0x618   :  { %v724_v57 = vpop.f32.mrb[4].mxu1 }
 0x619   :  { %827 = vrot.lane.b32.xlu1 %v724_v57, %s2468_s13  ;;  %v1964_v56 = vpop.f32.mrb[5].mxu1  ;;  %v2100_v57 = vld [vmem:[%s3146_s9 + $0x70] ss:$8 sps:$4 sm:$0xff]  }
 0x61a   :  { %v727_v58 = vpop.f32.mrb[6].mxu1 }
 0x61b   :  { %829 = vrot.lane.b32.xlu0 %v727_v58, %s2468_s13  ;;  %v1965_v59 = vpop.f32.mrb[7].mxu1 }
 0x61c   :  { %v771_v60 = vpop.f32.mrb[12].mxu0 }
 0x61d   :  { %835 = vrot.lane.b32.xlu1 %v771_v60, %s2483_s26  ;;  %v1970_v11 = vpop.f32.mrb[13].mxu0 }
 0x61e   :  { %v774_v61 = vpop.f32.mrb[14].mxu0 }
 0x61f   :  { %837 = vrot.lane.b32.xlu0 %v774_v61, %s2483_s26  ;;  %v1971_v62 = vpop.f32.mrb[15].mxu0 }
 0x620   :  { %v818_v63 = vpop.f32.mrb[8].mxu1 }
 0x621   :  { %v1976_v1 = vpop.f32.mrb[9].mxu1  ;;  %843 = vrot.lane.b32.xlu1 %v818_v63, %s2482_s10  ;;  %v1859_v63 = vld [vmem:[#allocation10] ss:$0 sm:$0xff] }
 0x622   :  { %v821_v3 = vpop.f32.mrb[10].mxu1 }
 0x623   :  { %v1977_v4 = vpop.f32.mrb[11].mxu1  ;;  %845 = vrot.lane.b32.xlu0 %v821_v3, %s2482_s10 }
 0x624   :  { %v1860_v4 = vld [vmem:[#allocation12] ss:$0 sm:$0xff] }
 0x68b   :  { %v828_v5 = vpop.permute.xlu1 %827 }
 0x68c   :  { %v850_v9 = vsel %vm849_vm11, %v676_v47, %v828_v5  ;;  %v2094_v47 = vld [vmem:[%s3146_s9 + $0x50] ss:$8 sps:$4 sm:$0xff]  }
 0x68d   :  { %v830_v6 = vpop.permute.xlu0 %829 }
 0x68e   :  { %v851_v13 = vsel %vm849_vm11, %v679_v54, %v830_v6  ;;  %v2099_v54 = vld [vmem:[%s3146_s9 + $0x64] ss:$8 sps:$4 sm:$0xff]  }
 0x68f   :  { %v836_v7 = vpop.permute.xlu1 %835 }
 0x690   :  { %v853_v12 = vsel %vm852_vm12, %v850_v9, %v836_v7 }
 0x691   :  { %v838_v8 = vpop.permute.xlu0 %837 }
 0x692   :  { %v854_v17 = vsel %vm852_vm12, %v851_v13, %v838_v8 }
 0x693   :  { %v844_v23 = vpop.permute.xlu1 %843 }
 0x694   :  { %v856_v15 = vsel %vm855_vm13, %v853_v12, %v844_v23 }
 0x695   :  { %v858_v18 = vadd.f32 %v856_v15, %v2754_v21  ;;  %v846_v19 = vpop.permute.xlu0 %845  ;;  %v2084_v21 = vld [vmem:[%s3146_s9 + $0x14] ss:$8 sps:$4 sm:$0xff]  }
 0x696   :  { %v857_v14 = vsel %vm855_vm13, %v854_v17, %v846_v19  ;;  %1011 = vmatprep.subr.bf16.mxu0 %v2084_v21 }
 0x697   :  { %v859_v20 = vadd.f32 %v857_v14, %v2758_v24  ;;  %v867_v22 = vadd.f32 %v1858_v16, %v858_v18  ;;  %v2082_v24 = vld [vmem:[%s3146_s9 + $0x10] ss:$8 sps:$4 sm:$0xff]   ;;  %v1053_v14 = vld [vmem:[#allocation13] sm:$0xf] }
 0x698   :  { %1012 = vmatpush1.bf16.msra.mxu0 %v2082_v24 }
 0x699   :  { %869 = vadd.xlane.f32.xlu1 %v867_v22  ;;  %v868_v25 = vadd.f32 %v1858_v16, %v859_v20  ;;  %1013 = vmatprep.subr.bf16.mxu0 %v2087_v42 }
 0x69b   :  { %871 = vadd.xlane.f32.xlu0 %v868_v25 }
 0x69c   :  { %1014 = vmatpush1.bf16.msra.mxu0 %v2085_v44 }
 0x69d   :  { %1015 = vmatprep.subr.bf16.mxu0 %v2090_v45 }
 0x6a0   :  { %1016 = vmatpush1.bf16.msra.mxu0 %v2088_v46 }
 0x6a1   :  { %1017 = vmatprep.subr.bf16.mxu0 %v2093_v41 }
 0x6a4   :  { %1018 = vmatpush1.bf16.msra.mxu0 %v2091_v48 }
 0x6a5   :  { %1019 = vmatprep.subr.bf16.mxu0 %v2096_v49 }
 0x6a8   :  { %1020 = vmatpush1.bf16.msra.mxu0 %v2094_v47 }
 0x6a9   :  { %1021 = vmatprep.subr.bf16.mxu0 %v2099_v54 }
 0x6ac   :  { %1022 = vmatpush1.bf16.msra.mxu0 %v2097_v51 }
 0x6ad   :  { %1023 = vmatprep.subr.bf16.mxu0 %v2102_v55 }
 0x6b0   :  { %1024 = vmatpush1.bf16.msra.mxu0 %v2100_v57 }
 0x6b1   :  { %2002 = vmatprep.subr.bf16.mxu0 %v2478_v0 }
 0x726   :  { %v870_v31 = vpop.xlane.xlu1 %869 }
 0x727   :  { %v874_v33 = vmul.f32 0.0078125, %v870_v31 }
 0x728   :  { %v872_v34 = vpop.xlane.xlu0 %871 }
 0x729   :  { %v876_v32 = vsub.f32 %v867_v22, %v874_v33  ;;  %v875_v35 = vmul.f32 0.0078125, %v872_v34 }
 0x72b   :  { %v877_v37 = vsub.f32 %v868_v25, %v875_v35  ;;  %v878_v39 = vmul.f32 %v876_v32, %v876_v32 }
 0x72d   :  { %880 = vadd.xlane.f32.xlu0 %v878_v39  ;;  %v879_v40 = vmul.f32 %v877_v37, %v877_v37 }
 0x72f   :  { %882 = vadd.xlane.f32.xlu1 %v879_v40 }
 0x7ba   :  { %v881_v56 = vpop.xlane.xlu0 %880 }
 0x7bb   :  { %v884_v58 = vmul.f32 0.0078125, %v881_v56 }
 0x7bc   :  { %v883_v59 = vpop.xlane.xlu1 %882 }
 0x7bd   :  { %v886_v60 = vadd.f32 1e-05, %v884_v58  ;;  %v885_v11 = vmul.f32 0.0078125, %v883_v59 }
 0x7bf   :  { %2148 = vrsqrt.f32 %v886_v60  ;;  %v887_v61 = vadd.f32 1e-05, %v885_v11 }
 0x7c1   :  { %2150 = vrsqrt.f32 %v887_v61 }
 0x7c9   :  { %v2149_v62 = vpop.eup %2148 }
 0x7ca   :  { %v890_v1 = vmul.f32 %v2149_v62, %v876_v32 }
 0x7cb   :  { %v2151_v3 = vpop.eup %2150 }
 0x7cc   :  { %v891_v5 = vmul.f32 %v2151_v3, %v877_v37  ;;  %v899_v6 = vmul.f32 %v1859_v63, %v890_v1 }
 0x7ce   :  { %v900_v7 = vmul.f32 %v1859_v63, %v891_v5  ;;  %v908_v8 = vadd.f32 %v1860_v4, %v899_v6 }
 0x7d0   :  { %v909_v9 = vadd.f32 %v1860_v4, %v900_v7  ;;  %v910_v12 = vmax.f32 %v908_v8, 0.0 }
 0x7d2   :  { %v911_v23 = vmax.f32 %v909_v9, 0.0 }
 0x7d4   :  { %v912_v13 = vpack.c.bf16 %v911_v23, %v910_v12 }
 0x7d6   :  { %1042 = vmatmul.mubr.bf16.vlgmr.msra.gmra.mrb[16].mxu0 %v912_v13 }
 0x7d7   :  { %2004 = vmatprep.mubr.msk.bf16.mxu0 %vm2479_vm0, %v2478_v0 }
 0x8a9   :  { %v1043_v15 = vpop.f32.mrb[16].mxu0 }
 0x8aa   :  { %v2943_v16 = vpop.f32.mrb[17].mxu0 }
 0x8ab   :  { %v1047_v17 = vpop.f32.mrb[18].mxu0 }
 0x8ac   :  { %v2945_v18 = vpack.c.bf16 %v1047_v17, %v1043_v15  ;;  %v2947_v19 = vpop.f32.mrb[19].mxu0 }
 0x8ae   :  { %1979 = vmatpush3.bf16.xpose.msra.mxu1 %v2945_v18 }
 0x8af   :  { %1984 = vmatprep.subr.bf16.mxu1 %v2478_v0 }
 0x8b5   :  { %1981 = vmatmul.mubr.bf16.vlgmr.msra.gmra.mrb[12].mxu1 %v1053_v14 }
 0x8b6   :  { %1985 = vmatpush3.bf16.msra.mxu1 %v2945_v18  ;;  %1986 = vmatprep.mubr.msk.bf16.mxu1 %vm2479_vm0, %v2478_v0 }
 0x8b7   :  { %1990 = vmatprep.subr.bf16.mxu1 %v2478_v0 }
 0x988   :  { %v1088_v20 = vpop.f32.mrb[12].mxu1 }
 0x989   :  { %v1982_v22 = vpop.f32.mrb[13].mxu1  ;;  %v1097_v25 = vrot.slane %v1088_v20, %v404_v29  ;;  %v1108_v21 = vrot.slane %v1088_v20, %v415_v28  ;;  %v1119_v24 = vrot.slane %v1088_v20, %v426_v36  ;;  %v1130_v31 = vrot.slane %v1088_v20, %v437_v38 }
 0x98a   :  { %v1091_v30 = vpop.f32.mrb[14].mxu1  ;;  %v1145_v29 = vrot.slane %v1088_v20, %v2781_v43 }
 0x98b   :  { %1103 = vbcast.lane.b32.xlu1 %v1097_v25, 264  ;;  %1099 = vbcast.lane.b32.xlu0 %v1097_v25, 256  ;;  %v1983_v26 = vpop.f32.mrb[15].mxu1 }
 0x98c   :  { %v1153_v33 = vrot.slane %v1145_v29, %v2781_v43  ;;  %v1146_v34 = vcombine.high %v1145_v29, %v1145_v29 }
 0x98e   :  { %v1166_v32 = vrot.slane %v1153_v33, %v2786_v50  ;;  %v1160_v28 = vrot.slane %v1146_v34, %v2781_v43  ;;  %v1161_v40 = vcombine.high %v1153_v33, %v1153_v33 }
 0x98f   :  { %1110 = vbcast.lane.b32.xlu1 %v1108_v21, 256  ;;  %1114 = vbcast.lane.b32.xlu0 %v1108_v21, 264 }
 0x990   :  { %v1170_v27 = vrot.slane %v1160_v28, %v2786_v50  ;;  %v1174_v47 = vrot.slane %v1161_v40, %v2786_v50  ;;  %v1162_v51 = vcombine.high %v1160_v28, %v1160_v28 }
 0x992   :  { %v1178_v1 = vrot.slane %v1162_v51, %v2786_v50 }
 0x993   :  { %1121 = vbcast.lane.b32.xlu1 %v1119_v24, 256  ;;  %1125 = vbcast.lane.b32.xlu0 %v1119_v24, 264 }
 0x997   :  { %1132 = vbcast.lane.b32.xlu1 %v1130_v31, 256  ;;  %1136 = vbcast.lane.b32.xlu0 %v1130_v31, 264 }
 0x9fd   :  { %v1104_v35 = vpop.permute.xlu1 %1103  ;;  %v1100_v37 = vpop.permute.xlu0 %1099 }
 0x9fe   :  { %v1184_v39 = vadd.f32 %v1166_v32, %v1104_v35  ;;  %v1183_v36 = vadd.f32 %v1166_v32, %v1100_v37 }
 0xa00   :  { %v1192_v42 = vmul.f32 0.2, %v1184_v39  ;;  %v1191_v44 = vmul.f32 0.2, %v1183_v36 }
 0xa01   :  { %v1111_v38 = vpop.permute.xlu1 %1110  ;;  %v1115_v45 = vpop.permute.xlu0 %1114 }
 0xa02   :  { %v1200_v46 = vmax.f32 %v1184_v39, %v1192_v42  ;;  %v1199_v41 = vmax.f32 %v1183_v36, %v1191_v44  ;;  %v1185_v48 = vadd.f32 %v1170_v27, %v1111_v38  ;;  %v1186_v49 = vadd.f32 %v1170_v27, %v1115_v45 }
 0xa04   :  { %v1193_v54 = vmul.f32 0.2, %v1185_v48  ;;  %v1194_v43 = vmul.f32 0.2, %v1186_v49  ;;  %v1208_v55 = vadd.f32 %v1200_v46, %v2800_v10  ;;  %v1207_v57 = vadd.f32 %v1199_v41, %v2797_v2 }
 0xa05   :  { %v1122_v56 = vpop.permute.xlu1 %1121  ;;  %v1126_v58 = vpop.permute.xlu0 %1125 }
 0xa06   :  { %v1201_v59 = vmax.f32 %v1185_v48, %v1193_v54  ;;  %v1202_v60 = vmax.f32 %v1186_v49, %v1194_v43  ;;  %v1187_v11 = vadd.f32 %v1174_v47, %v1122_v56  ;;  %v1188_v61 = vadd.f32 %v1174_v47, %v1126_v58 }
 0xa07   :  { %v1218_v62 = vsel %vm231_vm1, %v1208_v55, -inf  ;;  %v1215_v63 = vsel %vm231_vm1, %v1207_v57, -inf }
 0xa08   :  { %v1195_v3 = vmul.f32 0.2, %v1187_v11  ;;  %v1196_v4 = vmul.f32 0.2, %v1188_v61  ;;  %1219 = vmax.xlane.f32.xlu0 %v1218_v62  ;;  %1216 = vmax.xlane.f32.xlu1 %v1215_v63  ;;  %v1209_v5 = vadd.f32 %v1201_v59, %v2797_v2  ;;  %v1210_v6 = vadd.f32 %v1202_v60, %v2800_v10 }
 0xa09   :  { %v1133_v7 = vpop.permute.xlu1 %1132  ;;  %v1137_v8 = vpop.permute.xlu0 %1136 }
 0xa0a   :  { %v1203_v9 = vmax.f32 %v1187_v11, %v1195_v3  ;;  %v1204_v12 = vmax.f32 %v1188_v61, %v1196_v4  ;;  %v1189_v23 = vadd.f32 %v1178_v1, %v1133_v7  ;;  %v1190_v13 = vadd.f32 %v1178_v1, %v1137_v8 }
 0xa0b   :  { %v1221_v15 = vsel %vm231_vm1, %v1209_v5, -inf  ;;  %v1224_v17 = vsel %vm231_vm1, %v1210_v6, -inf }
 0xa0c   :  { %v1197_v14 = vmul.f32 0.2, %v1189_v23  ;;  %v1198_v50 = vmul.f32 0.2, %v1190_v13  ;;  %1222 = vmax.xlane.f32.xlu0 %v1221_v15  ;;  %1225 = vmax.xlane.f32.xlu1 %v1224_v17  ;;  %v1211_v20 = vadd.f32 %v1203_v9, %v2797_v2  ;;  %v1212_v22 = vadd.f32 %v1204_v12, %v2800_v10 }
 0xa0e   :  { %v1205_v25 = vmax.f32 %v1189_v23, %v1197_v14  ;;  %v1206_v30 = vmax.f32 %v1190_v13, %v1198_v50  ;;  %v1227_v26 = vsel %vm231_vm1, %v1211_v20, -inf  ;;  %v1230_v21 = vsel %vm231_vm1, %v1212_v22, -inf }
 0xa10   :  { %1228 = vmax.xlane.f32.xlu0 %v1227_v26  ;;  %1231 = vmax.xlane.f32.xlu1 %v1230_v21  ;;  %v1213_v24 = vadd.f32 %v1205_v25, %v2797_v2  ;;  %v2984_v31 = vadd.f32 %v1206_v30, %v2800_v10 }
 0xa12   :  { %v1233_v29 = vsel %vm231_vm1, %v1213_v24, -inf  ;;  %v1236_v33 = vsel %vm231_vm1, %v2984_v31, -inf }
 0xa14   :  { %1234 = vmax.xlane.f32.xlu0 %v1233_v29  ;;  %1237 = vmax.xlane.f32.xlu1 %v1236_v33 }
 0xa95   :  { %v1217_v34 = vpop.xlane.xlu1 %1216  ;;  %v1220_v32 = vpop.xlane.xlu0 %1219 }
 0xa96   :  { %v1239_v28 = vsub.f32 %v1207_v57, %v1217_v34  ;;  %v1240_v35 = vsub.f32 %v1208_v55, %v1220_v32 }
 0xa98   :  { %v1247_v37 = vmul.f32 1.442695, %v1239_v28  ;;  %v1249_v39 = vmul.f32 1.442695, %v1240_v35 }
 0xa99   :  { %v1226_v36 = vpop.xlane.xlu1 %1225  ;;  %v1223_v40 = vpop.xlane.xlu0 %1222 }
 0xa9a   :  { %2152 = vpow2.f32 %v1247_v37  ;;  %v1242_v2 = vsub.f32 %v1210_v6, %v1226_v36  ;;  %v1241_v42 = vsub.f32 %v1209_v5, %v1223_v40 }
 0xa9b   :  { %2154 = vpow2.f32 %v1249_v39 }
 0xa9c   :  { %v1253_v10 = vmul.f32 1.442695, %v1242_v2  ;;  %v1251_v44 = vmul.f32 1.442695, %v1241_v42 }
 0xa9d   :  { %v1232_v27 = vpop.xlane.xlu1 %1231  ;;  %v1229_v38 = vpop.xlane.xlu0 %1228 }
 0xa9e   :  { %2156 = vpow2.f32 %v1253_v10  ;;  %v1244_v45 = vsub.f32 %v1212_v22, %v1232_v27  ;;  %v1243_v46 = vsub.f32 %v1211_v20, %v1229_v38 }
 0xa9f   :  { %2158 = vpow2.f32 %v1251_v44 }
 0xaa0   :  { %v1257_v41 = vmul.f32 1.442695, %v1244_v45  ;;  %v1255_v48 = vmul.f32 1.442695, %v1243_v46 }
 0xaa1   :  { %v1235_v49 = vpop.xlane.xlu0 %1234  ;;  %v1238_v23 = vpop.xlane.xlu1 %1237 }
 0xaa2   :  { %2160 = vpow2.f32 %v1257_v41  ;;  %v1245_v47 = vsub.f32 %v1213_v24, %v1235_v49  ;;  %v1246_v13 = vsub.f32 %v2984_v31, %v1238_v23  ;;  %v2107_v23 = vld [vmem:[%s3149_s12 + $0x20] sm:$0xff]  }
 0xaa3   :  { %2162 = vpow2.f32 %v1255_v48 }
 0xaa4   :  { %v2153_v51 = vpop.eup %2152  ;;  %v1259_v54 = vmul.f32 1.442695, %v1245_v47  ;;  %v1261_v15 = vmul.f32 1.442695, %v1246_v13  ;;  %v2108_v13 = vld [vmem:[%s3149_s12 + $0x28] sm:$0xff]  }
 0xaa5   :  { %v2155_v43 = vpop.eup %2154  ;;  %v2990_v55 = vmul.f32 %v2153_v51, %v2789_v52 }
 0xaa6   :  { %v2993_v57 = vmul.f32 %v2155_v43, %v2791_v53  ;;  %2164 = vpow2.f32 %v1259_v54 }
 0xaa7   :  { %v1271_v56 = vsel %vm231_vm1, %v2990_v55, 0.0  ;;  %2166 = vpow2.f32 %v1261_v15  ;;  %v2109_v15 = vld [vmem:[%s3149_s12 + $0x30] sm:$0xff]  }
 0xaa8   :  { %v2157_v58 = vpop.eup %2156  ;;  %1272 = vadd.xlane.f32.xlu0 %v1271_v56  ;;  %v1274_v59 = vsel %vm231_vm1, %v2993_v57, 0.0 }
 0xaa9   :  { %v2159_v60 = vpop.eup %2158  ;;  %1275 = vadd.xlane.f32.xlu1 %v1274_v59  ;;  %v3000_v11 = vmul.f32 %v2157_v58, %v2791_v53 }
 0xaaa   :  { %v3003_v61 = vmul.f32 %v2159_v60, %v2789_v52 }
 0xaab   :  { %v1280_v62 = vsel %vm231_vm1, %v3000_v11, 0.0 }
 0xaac   :  { %v2161_v63 = vpop.eup %2160  ;;  %v1277_v1 = vsel %vm231_vm1, %v3003_v61, 0.0 }
 0xaad   :  { %v2163_v3 = vpop.eup %2162  ;;  %1281 = vadd.xlane.f32.xlu1 %v1280_v62  ;;  %1278 = vadd.xlane.f32.xlu0 %v1277_v1  ;;  %v3010_v4 = vmul.f32 %v2161_v63, %v2791_v53  ;;  %v2104_v63 = vld [vmem:[%s3149_s12 + $0x8] sm:$0xff]  }
 0xaae   :  { %v3013_v5 = vmul.f32 %v2163_v3, %v2789_v52 }
 0xaaf   :  { %v1286_v6 = vsel %vm231_vm1, %v3010_v4, 0.0 }
 0xab0   :  { %v1283_v7 = vsel %vm231_vm1, %v3013_v5, 0.0  ;;  %v2165_v8 = vpop.eup %2164 }
 0xab1   :  { %1287 = vadd.xlane.f32.xlu1 %v1286_v6  ;;  %1284 = vadd.xlane.f32.xlu0 %v1283_v7  ;;  %v3020_v9 = vmul.f32 %v2165_v8, %v2789_v52  ;;  %v2167_v17 = vpop.eup %2166  ;;  %v2106_v7 = vld [vmem:[%s3149_s12 + $0x18] sm:$0xff]  }
 0xab2   :  { %v3030_v14 = vmul.f32 %v2167_v17, %v2791_v53  ;;  %v2110_v17 = vld [vmem:[%s3149_s12 + $0x38] sm:$0xff]  }
 0xab3   :  { %v1289_v12 = vsel %vm231_vm1, %v3020_v9, 0.0 }
 0xab4   :  { %v1292_v52 = vsel %vm231_vm1, %v3030_v14, 0.0 }
 0xab5   :  { %1290 = vadd.xlane.f32.xlu0 %v1289_v12 }
 0xac2   :  { %1423 = vrot.lane.b32.xlu1 %v2945_v18, %s2483_s26 }
 0xacb   :  { %1376 = vrot.lane.b32.xlu0 %v2945_v18, %s2482_s10 }
 0xae6   :  { %1293 = vadd.xlane.f32.xlu1 %v1292_v52 }
 0xaf7   :  { %1470 = vrot.lane.b32.xlu1 %v2945_v18, %s2468_s13 }
 0xb35   :  { %v1273_v50 = vpop.xlane.xlu0 %1272 }
 0xb36   :  { %v1276_v20 = vpop.xlane.xlu1 %1275  ;;  %vm1295_vm14 = vcmp.gt.f32.partialorder %v1273_v50, 0.0 }
 0xb37   :  { %vm1296_vm15 = vcmp.gt.f32.partialorder %v1276_v20, 0.0  ;;  %v1303_v22 = vsel %vm1295_vm14, %v1273_v50, 1.0 }
 0xb38   :  { %v1304_v25 = vsel %vm1296_vm15, %v1276_v20, 1.0  ;;  %2168 = vrcp.f32 %v1303_v22 }
 0xb39   :  { %2170 = vrcp.f32 %v1304_v25 }
 0xb3a   :  { %v1282_v30 = vpop.xlane.xlu1 %1281  ;;  %v1279_v26 = vpop.xlane.xlu0 %1278 }
 0xb3b   :  { %vm1298_vm3 = vcmp.gt.f32.partialorder %v1282_v30, 0.0  ;;  %vm1297_vm4 = vcmp.gt.f32.partialorder %v1279_v26, 0.0 }
 0xb3c   :  { %v1306_v53 = vsel %vm1298_vm3, %v1282_v30, 1.0  ;;  %v1305_v21 = vsel %vm1297_vm4, %v1279_v26, 1.0 }
 0xb3d   :  { %2172 = vrcp.f32 %v1306_v53 }
 0xb3e   :  { %2174 = vrcp.f32 %v1305_v21  ;;  %v1288_v24 = vpop.xlane.xlu1 %1287  ;;  %v1285_v31 = vpop.xlane.xlu0 %1284 }
 0xb3f   :  { %vm1300_vm5 = vcmp.gt.f32.partialorder %v1288_v24, 0.0  ;;  %vm1299_vm6 = vcmp.gt.f32.partialorder %v1285_v31, 0.0 }
 0xb40   :  { %v1308_v18 = vsel %vm1300_vm5, %v1288_v24, 1.0  ;;  %v1307_v33 = vsel %vm1299_vm6, %v1285_v31, 1.0 }
 0xb41   :  { %2176 = vrcp.f32 %v1308_v18 }
 0xb42   :  { %v2169_v29 = vpop.eup %2168  ;;  %v1291_v34 = vpop.xlane.xlu0 %1290  ;;  %2178 = vrcp.f32 %v1307_v33 }
 0xb43   :  { %v2171_v32 = vpop.eup %2170  ;;  %v1319_v28 = vmul.f32 %v2169_v29, %v2990_v55  ;;  %v1424_v38 = vpop.permute.xlu1 %1423  ;;  %vm1301_vm7 = vcmp.gt.f32.partialorder %v1291_v34, 0.0 }
 0xb44   :  { %v1320_v35 = vmul.f32 %v2171_v32, %v2993_v57  ;;  %v1309_v48 = vsel %vm1301_vm7, %v1291_v34, 1.0  ;;  %v1881_v32 = vld [vmem:[#allocation15] ss:$0 sm:$0xff] }
 0xb45   :  { %2180 = vrcp.f32 %v1309_v48 }
 0xb46   :  { %v1377_v37 = vpop.permute.xlu0 %1376  ;;  %v1327_v39 = vpack.c.bf16 %v1320_v35, %v1319_v28 }
 0xb47   :  { %v2173_v36 = vpop.eup %2172 }
 0xb48   :  { %v2175_v40 = vpop.eup %2174  ;;  %1987 = vmatmul.mubr.msk.bf16.vlgmr.msra.gmra.mrb[16].mxu1 %vm231_vm1, %v1327_v39  ;;  %v1322_v2 = vmul.f32 %v2173_v36, %v3000_v11 }
 0xb49   :  { %1991 = vmatpush3.bf16.msra.mxu1 %v1377_v37  ;;  %1992 = vmatprep.mubr.msk.bf16.mxu1 %vm2479_vm0, %v2478_v0  ;;  %v1321_v42 = vmul.f32 %v2175_v40, %v3003_v61  ;;  %v2103_v61 = vld [vmem:[%s3149_s12] sm:$0xff]  }
 0xb4a   :  { %1996 = vmatprep.subr.bf16.mxu1 %v2478_v0  ;;  %v2111_v40 = vld [vmem:[%s3151_s14] sm:$0xff]  }
 0xb4b   :  { %v2177_v10 = vpop.eup %2176  ;;  %v1328_v44 = vpack.c.bf16 %v1322_v2, %v1321_v42  ;;  %v1882_v2 = vld [vmem:[#allocation16] ss:$0 sm:$0xff] }
 0xb4c   :  { %v2179_v27 = vpop.eup %2178  ;;  %v1324_v45 = vmul.f32 %v2177_v10, %v3010_v4 }
 0xb4d   :  { %v1323_v46 = vmul.f32 %v2179_v27, %v3013_v5  ;;  %v2105_v5 = vld [vmem:[%s3149_s12 + $0x10] sm:$0xff]  }
 0xb4f   :  { %v1329_v41 = vpack.c.bf16 %v1324_v45, %v1323_v46  ;;  %v2181_v54 = vpop.eup %2180 }
 0xb50   :  { %1993 = vmatmul.mubr.msk.bf16.vlgmr.msra.gmra.mrb[20].mxu1 %vm231_vm1, %v1328_v44  ;;  %v1325_v55 = vmul.f32 %v2181_v54, %v3020_v9 }
 0xb51   :  { %1997 = vmatpush3.bf16.msra.mxu1 %v1424_v38  ;;  %1998 = vmatprep.mubr.msk.bf16.mxu1 %vm2479_vm0, %v2478_v0 }
 0xb52   :  { %2008 = vmatprep.subr.bf16.mxu1 %v2478_v0 }
 0xb58   :  { %1999 = vmatmul.mubr.msk.bf16.vlgmr.msra.gmra.mrb[24].mxu1 %vm231_vm1, %v1329_v41  ;;  %v2113_v41 = vld [vmem:[%s3153_s16] sm:$0xff]  }
 0xb59   :  { %2024 = vmatprep.mubr.msk.bf16.mxu1 %vm2479_vm0, %v2478_v0  ;;  %2009 = vmatpush3.bf16.msra.mxu1 %v2103_v61 }
 0xb5a   :  { %2010 = vmatprep.subr.bf16.mxu1 %v2478_v0 }
 0xb5d   :  { %2011 = vmatpush3.bf16.msra.mxu1 %v2104_v63 }
 0xb5e   :  { %2012 = vmatprep.subr.bf16.mxu1 %v2478_v0 }
 0xb61   :  { %2013 = vmatpush3.bf16.msra.mxu1 %v2105_v5 }
 0xb62   :  { %2014 = vmatprep.subr.bf16.mxu1 %v2478_v0 }
 0xb65   :  { %2015 = vmatpush3.bf16.msra.mxu1 %v2106_v7 }
 0xb66   :  { %2016 = vmatprep.subr.bf16.mxu1 %v2478_v0 }
 0xb69   :  { %2017 = vmatpush3.bf16.msra.mxu1 %v2107_v23 }
 0xb6a   :  { %2018 = vmatprep.subr.bf16.mxu1 %v2478_v0 }
 0xb6d   :  { %2019 = vmatpush3.bf16.msra.mxu1 %v2108_v13 }
 0xb6e   :  { %2020 = vmatprep.subr.bf16.mxu1 %v2478_v0 }
 0xb71   :  { %2021 = vmatpush3.bf16.msra.mxu1 %v2109_v15 }
 0xb72   :  { %2022 = vmatprep.subr.bf16.mxu1 %v2478_v0 }
 0xb73   :  { %v1294_v49 = vpop.xlane.xlu1 %1293 }
 0xb74   :  { %vm1302_vm8 = vcmp.gt.f32.partialorder %v1294_v49, 0.0 }
 0xb75   :  { %v1310_v47 = vsel %vm1302_vm8, %v1294_v49, 1.0  ;;  %2023 = vmatpush3.bf16.msra.mxu1 %v2110_v17  ;;  %v2114_v49 = vld [vmem:[%s3153_s16 + $0x8] sm:$0xff]  }
 0xb76   :  { %2182 = vrcp.f32 %v1310_v47  ;;  %v2115_v47 = vld [vmem:[%s3153_s16 + $0x10] sm:$0xff]  }
 0xb77   :  { %v1471_v51 = vpop.permute.xlu1 %1470 }
 0xb78   :  { %2003 = vmatpush3.bf16.msra.mxu0 %v1471_v51  ;;  %v1891_v51 = vld [vmem:[#allocation18] ss:$0 sm:$0xff] }
 0xb79   :  { %2028 = vmatprep.subr.bf16.mxu0 %v2478_v0 }
 0xb80   :  { %v2183_v43 = vpop.eup %2182 }
 0xb81   :  { %v1326_v57 = vmul.f32 %v2183_v43, %v3030_v14 }
 0xb83   :  { %v1330_v56 = vpack.c.bf16 %v1326_v57, %v1325_v55 }
 0xb85   :  { %2005 = vmatmul.mubr.msk.bf16.vlgmr.msra.gmra.mrb[20].mxu0 %vm231_vm1, %v1330_v56 }
 0xb86   :  { %2032 = vmatprep.mubr.msk.bf16.mxu0 %vm2479_vm0, %v2478_v0  ;;  %2029 = vmatpush3.bf16.msra.mxu0 %v2111_v40 }
 0xb87   :  { %2030 = vmatprep.subr.bf16.mxu0 %v2478_v0 }
 0xc1b   :  { %v1368_v58 = vpop.f32.mrb[16].mxu1 }
 0xc1c   :  { %v1988_v59 = vpop.f32.mrb[17].mxu1 }
 0xc1d   :  { %v1371_v60 = vpop.f32.mrb[18].mxu1 }
 0xc1e   :  { %v1989_v11 = vpop.f32.mrb[19].mxu1 }
 0xc23   :  { %v1416_v62 = vpop.f32.mrb[20].mxu1 }
 0xc24   :  { %1519 = vrot.lane.b32.xlu0 %v1416_v62, %s2468_s13  ;;  %v1994_v1 = vpop.f32.mrb[21].mxu1 }
 0xc25   :  { %v1419_v3 = vpop.f32.mrb[22].mxu1 }
 0xc26   :  { %1521 = vrot.lane.b32.xlu1 %v1419_v3, %s2468_s13  ;;  %v1995_v4 = vpop.f32.mrb[23].mxu1 }
 0xc2b   :  { %v1463_v6 = vpop.f32.mrb[24].mxu1 }
 0xc2c   :  { %1527 = vrot.lane.b32.xlu0 %v1463_v6, %s2483_s26  ;;  %v2000_v8 = vpop.f32.mrb[25].mxu1 }
 0xc2d   :  { %v1466_v9 = vpop.f32.mrb[26].mxu1 }
 0xc2e   :  { %1529 = vrot.lane.b32.xlu1 %v1466_v9, %s2483_s26  ;;  %v2001_v12 = vpop.f32.mrb[27].mxu1 }
 0xc58   :  { %v1510_v14 = vpop.f32.mrb[20].mxu0 }
 0xc59   :  { %1535 = vrot.lane.b32.xlu0 %v1510_v14, %s2482_s10  ;;  %v2006_v52 = vpop.f32.mrb[21].mxu0 }
 0xc5a   :  { %v1513_v50 = vpop.f32.mrb[22].mxu0 }
 0xc5b   :  { %1537 = vrot.lane.b32.xlu1 %v1513_v50, %s2482_s10  ;;  %v2007_v20 = vpop.f32.mrb[23].mxu0 }
 0xc96   :  { %v1520_v22 = vpop.permute.xlu0 %1519 }
 0xc97   :  { %v1541_v53 = vsel %vm849_vm11, %v1368_v58, %v1520_v22 }
 0xc98   :  { %v1522_v25 = vpop.permute.xlu1 %1521 }
 0xc99   :  { %v1542_v31 = vsel %vm849_vm11, %v1371_v60, %v1522_v25  ;;  %v1895_v60 = vld [vmem:[#allocation19] ss:$0 sm:$0xff] }
 0xc9e   :  { %v1528_v30 = vpop.permute.xlu0 %1527 }
 0xc9f   :  { %v1543_v21 = vsel %vm852_vm12, %v1541_v53, %v1528_v30 }
 0xca0   :  { %v1530_v26 = vpop.permute.xlu1 %1529 }
 0xca1   :  { %v1544_v29 = vsel %vm852_vm12, %v1542_v31, %v1530_v26 }
 0xccb   :  { %v1536_v24 = vpop.permute.xlu0 %1535 }
 0xccc   :  { %v1545_v18 = vsel %vm855_vm13, %v1543_v21, %v1536_v24 }
 0xccd   :  { %v1547_v33 = vadd.f32 %v1545_v18, %v2943_v16  ;;  %v1538_v34 = vpop.permute.xlu1 %1537  ;;  %v2112_v16 = vld [vmem:[%s3151_s14 + $0x8] sm:$0xff]  }
 0xcce   :  { %v1546_v28 = vsel %vm855_vm13, %v1544_v29, %v1538_v34  ;;  %2031 = vmatpush3.bf16.msra.mxu0 %v2112_v16 }
 0xccf   :  { %v1548_v35 = vadd.f32 %v1546_v28, %v2947_v19  ;;  %v1556_v37 = vadd.f32 %v1881_v32, %v1547_v33  ;;  %2036 = vmatprep.subr.bf16.mxu0 %v2478_v0 }
 0xcd1   :  { %v1557_v39 = vadd.f32 %v1881_v32, %v1548_v35 }
 0xcd3   :  { %v1558_v36 = vpack.c.bf16 %v1557_v39, %v1556_v37 }
 0xcd5   :  { %2025 = vmatmul.mubr.bf16.vlgmr.msra.gmra.mrb[28].mxu1 %v1558_v36 }
 0xda8   :  { %v1664_v19 = vpop.f32.mrb[28].mxu1 }
 0xda9   :  { %v1665_v42 = vadd.f32 %v1882_v2, %v1664_v19  ;;  %v2026_v10 = vpop.f32.mrb[29].mxu1 }
 0xdaa   :  { %v1667_v44 = vpop.f32.mrb[30].mxu1 }
 0xdab   :  { %v1671_v27 = vmax.f32 %v1665_v42, 0.0  ;;  %v1668_v38 = vadd.f32 %v1882_v2, %v1667_v44  ;;  %v2027_v45 = vpop.f32.mrb[31].mxu1 }
 0xdad   :  { %v1672_v46 = vmax.f32 %v1668_v38, 0.0  ;;  %1819 = vrot.lane.b32.xlu0 %v1671_v27, %s2484_s25 }
 0xdaf   :  { %v1673_v48 = vpack.c.bf16 %v1672_v46, %v1671_v27  ;;  %1821 = vrot.lane.b32.xlu1 %v1672_v46, %s2484_s25 }
 0xdb1   :  { %2033 = vmatmul.mubr.msk.bf16.vlgmr.msra.gmra.mrb[24].mxu0 %vm849_vm11, %v1673_v48 }
 0xdb2   :  { %2037 = vmatpush3.bf16.msra.mxu0 %v2113_v41  ;;  %2042 = vmatprep.mubr.msk.bf16.mxu0 %vm2479_vm0, %v2478_v0 }
 0xdb3   :  { %2038 = vmatprep.subr.bf16.mxu0 %v2478_v0 }
 0xdb6   :  { %2039 = vmatpush3.bf16.msra.mxu0 %v2114_v49 }
 0xdb7   :  { %2040 = vmatprep.subr.bf16.mxu0 %v2478_v0 }
 0xdba   :  { %2041 = vmatpush3.bf16.msra.mxu0 %v2115_v47 }
 0xe1f   :  { %v1820_v0 = vpop.permute.xlu0 %1819 }
 0xe21   :  { %v1822_v5 = vpop.permute.xlu1 %1821 }
 0xe84   :  { %v1734_v54 = vpop.f32.mrb[24].mxu0 }
 0xe85   :  { %v2034_v43 = vpop.f32.mrb[25].mxu0  ;;  %v1735_v57 = vadd.f32 %v1891_v51, %v1734_v54 }
 0xe86   :  { %v1737_v55 = vpop.f32.mrb[26].mxu0 }
 0xe87   :  { %v1738_v56 = vadd.f32 %v1891_v51, %v1737_v55  ;;  %v2035_v58 = vpop.f32.mrb[27].mxu0 }
 0xe89   :  { %v1741_v59 = vpack.c.bf16 %v1738_v56, %v1735_v57 }
 0xe8b   :  { %2043 = vmatmul.mubr.msk.bf16.vlgmr.msra.gmra.mrb[28].mxu0 %vm313_vm2, %v1741_v59 }
 0xf5e   :  { %v1810_v11 = vpop.f32.mrb[28].mxu0 }
 0xf5f   :  { %v1811_v61 = vadd.f32 %v1895_v60, %v1810_v11  ;;  %v2044_v62 = vpop.f32.mrb[29].mxu0 }
 0xf60   :  { %v1813_v63 = vpop.f32.mrb[30].mxu0 }
 0xf61   :  { %v1825_v1 = vsel %vm231_vm1, %v1811_v61, %v1820_v0  ;;  %v1814_v3 = vadd.f32 %v1895_v60, %v1813_v63  ;;  %v2045_v4 = vpop.f32.mrb[31].mxu0 }
 0xf62   :  { %v1827_v6 = vsel %vm313_vm2, %v1825_v1, 0.0 }
 0xf63   :  { %1829 = vst [vmem:[%s3155_s18] sm:$0xff] %v1827_v6  ;;  %v1826_v7 = vsel %vm231_vm1, %v1814_v3, %v1822_v5 }
 0xf64   :  { %v1828_v8 = vsel %vm313_vm2, %v1826_v7, 0.0 }
 0xf65   :  { %1830 = vst [vmem:[%s3155_s18 + $0x8] sm:$0xff] %v1828_v8 }
 0xf66   :  { %1835 = vsyncpa [#allocation3], 1 }
 0xf67   :  { %1836 = vsyncpa [#allocation5], 1 }
 0xf68   :  { %1837 = vsyncpa [#allocation8], 1 }
 0xf69   :  { %1838 = vsyncpa [#allocation11], 1 }
 0xf6a   :  { %1839 = vsyncpa [#allocation14], 1 }
 0xf6b   :  { %1840 = vsyncpa [#allocation17], 1 }
 0xf6c   :  { %1841 = vsyncpa [#allocation20], 1 }

</bundles_post_ra>
